<compile_context>
chip_gen: v6e
topology: v6e:2x2x1
jax: 0.10.0
libtpu: 0.0.40
codegen_flags: <defaults>
</compile_context>

<pallas_src>
import math
from functools import partial

import jax
import jax.numpy as jnp
from jax import lax
from jax.experimental import pallas as pl
from jax.experimental.pallas import tpu as pltpu


def _block_kernel(x_ref, xt_ref, xb_ref, w_ref, b_ref, g_ref, *rest,
                  TH, W, Cin, Cp, has_ss, fat_k, ep_dtype):
    """One (batch, row-strip) tile per grid step.

    x_ref : (1, TH, W, Cin)   current row strip (compute dtype)
    xt_ref: (1, 1,  W, Cin)   row just above the strip (ignored at top edge)
    xb_ref: (1, 1,  W, Cin)   row just below the strip (ignored at bottom edge)
    w_ref : (9*Cin, Cp)       im2col-flattened conv weight, rows = (ky, kx, cin)
    b_ref : (1, Cp)           conv bias (f32)
    g_ref : (1, Cp)           RMSNorm gain with sqrt(W) pre-folded (f32)
    ss_ref: (1, 2, Cp)        [scale + 1 ; shift] for this batch elem (if has_ss)
    o_ref : (1, TH, W, Cp)    output strip (out dtype)
    xp_ref: (TH+2, W+2, Cin)  VMEM halo scratch
    """
    if has_ss:
        ss_ref, o_ref, xp_ref = rest
    else:
        o_ref, xp_ref = rest
        ss_ref = None

    s = pl.program_id(1)
    last = pl.num_programs(1) - 1
    cdt = xp_ref.dtype

    # ---- assemble the halo slab (frame-only zeroing, re-done each step) ----
    xp_ref[:, 0:1, :] = jnp.zeros((TH + 2, 1, Cin), cdt)
    xp_ref[:, W + 1:W + 2, :] = jnp.zeros((TH + 2, 1, Cin), cdt)
    # TODO(synk): DMA x straight into the slab interior (memory_space=pl.ANY +
    # make_async_copy, 2 slots) to drop this VMEM->VMEM interior copy.
    xp_ref[1:TH + 1, 1:W + 1, :] = x_ref[0]
    top = xt_ref[0, 0]                                   # (W, Cin)
    bot = xb_ref[0, 0]
    xp_ref[0, 1:W + 1, :] = jnp.where(s > 0, top, jnp.zeros_like(top))
    xp_ref[TH + 1, 1:W + 1, :] = jnp.where(s < last, bot, jnp.zeros_like(bot))

    # ---- 3x3 conv on the MXU ------------------------------------------------
    taps = [(dy, dx) for dy in range(3) for dx in range(3)]
    if fat_k:
        # Very small Cin: fuse the 9 taps along K (K = 9*Cin) so the MXU sees a
        # fat contraction; the materialized patch slab is tiny at these shapes.
        # TODO(synk): for production nets with many tiny-Cin layers, pre-pack
        # the (ky,kx,cin) patch axis lane-dense instead of Cin-on-lanes.
        xp = xp_ref[...]
        cols = [xp[dy:dy + TH, dx:dx + W, :].reshape(TH * W, Cin)
                for dy, dx in taps]
        patches = jnp.concatenate(cols, axis=1)                    # (TH*W, 9*Cin)
        acc = jnp.dot(patches, w_ref[...],
                      preferred_element_type=jnp.float32)          # (TH*W, Cp)
    else:
        # Real channel counts: 9 accumulating matmuls sliced straight from the
        # scratch ref -- no 9x im2col slab, only one (TH*W, Cin) slice live.
        acc = None
        for t, (dy, dx) in enumerate(taps):
            xs = xp_ref[dy:dy + TH, dx:dx + W, :].reshape(TH * W, Cin)
            part = jnp.dot(xs, w_ref[t * Cin:(t + 1) * Cin, :],
                           preferred_element_type=jnp.float32)
            acc = part if acc is None else acc + part

    acc = acc + b_ref[...]                                         # (TH*W, Cp) f32

    # ---- F.normalize(dim=channels) * g * sqrt(W), fused rsqrt on the EUP ----
    # Padded channels (if any) have exactly-zero acc, so they don't perturb it.
    ssq = jnp.sum(acc * acc, axis=-1, keepdims=True)               # (TH*W, 1)
    inv = lax.rsqrt(jnp.maximum(ssq, 1e-24))                       # 1 / max(||x||, 1e-12)
    y = (acc * inv * g_ref[...]).astype(ep_dtype)                  # sqrt(W) folded into g

    # ---- (scale, shift) + SiLU epilogue (bf16 on the fast path) -------------
    if has_ss:
        ss = ss_ref[0].astype(ep_dtype)                            # (2, Cp), +1 pre-folded
        y = y * ss[0:1, :] + ss[1:2, :]
    y = y * jax.nn.sigmoid(y)

    o_ref[0] = y.reshape(TH, W, Cp).astype(o_ref.dtype)


def _round_up(x, m):
    return (x + m - 1) // m * m


def _choose_tile_h(H, W, Cin, Cp, cbytes, obytes, budget=24 << 20):
    """Largest divisor of H whose per-strip buffers fit the budget, preferring
    >= 2 strips so both v7x TensorCores / the software pipeline get work even
    at batch 1."""
    per_row = W * (3 * Cin * cbytes + 2 * Cp * obytes + 4 * Cp)
    max_rows = max(1, budget // max(per_row, 1))
    cap = min(H, max_rows, max(8, H // 2) if H > 8 else H)
    for cand in range(int(cap), 0, -1):
        if H % cand == 0:
            return cand
    return 1


def _vmem_limit_bytes(TH, W, Cin, Cp, cb, ob, has_ss, fat_k):
    x_bytes = TH * W * Cin * cb + 2 * W * Cin * cb                 # strip + halo rows
    p_bytes = 9 * Cin * Cp * cb + 2 * Cp * 4 + (2 * Cp * 4 if has_ss else 0)
    o_bytes = TH * W * Cp * ob
    xp_bytes = (TH + 2) * (W + 2) * Cin * cb
    tmp = TH * W * Cp * 4 + TH * W * (9 * Cin if fat_k else Cin) * max(cb, 4)
    est = 2 * (x_bytes + p_bytes + o_bytes) + xp_bytes + tmp       # 2x = double buffer
    return int(min(48 << 20, max(32 << 20, 2 * est)))


def block_forward_nhwc(x_nhwc, weight_oihw, bias, g, scale_shift=None, *,
                       compute_dtype=jnp.bfloat16, out_dtype=None):
    """Block.forward on channels-last input.  x_nhwc: (N, H, W, Cin).
    Returns (N, H, W, Cout) in out_dtype (defaults to compute_dtype)."""
    N, H, W, Cin = x_nhwc.shape
    Cout = weight_oihw.shape[0]
    compute_dtype = jnp.dtype(compute_dtype)
    out_dtype = jnp.dtype(compute_dtype if out_dtype is None else out_dtype)
    # bf16 epilogue only on the bf16 fast path (v6e/v7x bf16 VPU/EUP);
    # the norm (sum-of-squares + rsqrt) always stays f32.
    ep_dtype = (jnp.dtype(jnp.bfloat16)
                if compute_dtype == jnp.dtype(jnp.bfloat16) else jnp.dtype(jnp.float32))

    # Lane-dense output channels only when the padding overhead is small
    # (for tiny Cout, 16x extra HBM is worse than a masked store).
    cp128 = _round_up(Cout, 128)
    Cp = cp128 if cp128 * 8 <= Cout * 9 else Cout

    fat_k = Cin < 32
    cb = compute_dtype.itemsize
    ob = out_dtype.itemsize
    TH = _choose_tile_h(H, W, Cin, Cp, cb, ob)
    n_strips = H // TH

    x = x_nhwc.astype(compute_dtype)

    # Conv weight OIHW -> rows ordered (ky, kx, cin), cols = cout (im2col order).
    w2d = jnp.transpose(weight_oihw, (2, 3, 1, 0)).reshape(9 * Cin, Cout)
    w2d = jnp.pad(w2d, ((0, 0), (0, Cp - Cout))).astype(compute_dtype)
    b2 = jnp.pad(bias.reshape(1, Cout).astype(jnp.float32), ((0, 0), (0, Cp - Cout)))
    # Fold the RMSNorm sqrt(W) host-side.  NOTE: the PyTorch module scales by
    # x.shape[-1]**0.5 where x is the NCHW conv output, i.e. the spatial width W.
    g2 = g.reshape(1, Cout).astype(jnp.float32) * (float(W) ** 0.5)
    g2 = jnp.pad(g2, ((0, 0), (0, Cp - Cout)))

    has_ss = scale_shift is not None
    inputs = [x, x, x, w2d, b2, g2]
    in_specs = [
        pl.BlockSpec((1, TH, W, Cin), lambda n, s: (n, s, 0, 0)),
        pl.BlockSpec((1, 1, W, Cin),
                     lambda n, s: (n, jnp.maximum(s * TH - 1, 0), 0, 0)),
        pl.BlockSpec((1, 1, W, Cin),
                     lambda n, s: (n, jnp.minimum((s + 1) * TH, H - 1), 0, 0)),
        pl.BlockSpec((9 * Cin, Cp), lambda n, s: (0, 0)),
        pl.BlockSpec((1, Cp), lambda n, s: (0, 0)),
        pl.BlockSpec((1, Cp), lambda n, s: (0, 0)),
    ]
    if has_ss:
        scale, shift = scale_shift                        # (N, Cout, 1, 1) each
        ss = jnp.stack([scale.reshape(N, Cout) + 1.0,     # fold the +1 host-side
                        shift.reshape(N, Cout)], axis=1).astype(jnp.float32)
        ss = jnp.pad(ss, ((0, 0), (0, 0), (0, Cp - Cout)))
        inputs.append(ss)                                 # one coalesced small DMA
        in_specs.append(pl.BlockSpec((1, 2, Cp), lambda n, s: (n, 0, 0)))

    kernel = partial(_block_kernel, TH=TH, W=W, Cin=Cin, Cp=Cp,
                     has_ss=has_ss, fat_k=fat_k, ep_dtype=ep_dtype)

    out = pl.pallas_call(
        kernel,
        out_shape=jax.ShapeDtypeStruct((N, H, W, Cp), out_dtype),
        grid_spec=pltpu.PrefetchScalarGridSpec(
            num_scalar_prefetch=0,
            grid=(N, n_strips),
            in_specs=in_specs,
            out_specs=pl.BlockSpec((1, TH, W, Cp), lambda n, s: (n, s, 0, 0)),
            scratch_shapes=[pltpu.VMEM((TH + 2, W + 2, Cin), compute_dtype)],
        ),
        compiler_params=pltpu.CompilerParams(
            dimension_semantics=("parallel", "parallel"),
            vmem_limit_bytes=_vmem_limit_bytes(TH, W, Cin, Cp, cb, ob, has_ss, fat_k),
        ),
    )(*inputs)

    if Cp != Cout:
        out = out[..., :Cout]
    return out


def block_forward(x_nchw, weight_oihw, bias, g, scale_shift=None, *,
                  compute_dtype=jnp.bfloat16, out_dtype=None):
    """PyTorch-layout (NCHW) adapter matching Block.forward.
    TODO(synk): plumb channels-last (NHWC) through the surrounding model and
    call block_forward_nhwc directly -- each of these transposes is a full HBM
    read+write pass on a memory-bound op."""
    out = block_forward_nhwc(jnp.transpose(x_nchw, (0, 2, 3, 1)),
                             weight_oihw, bias, g, scale_shift,
                             compute_dtype=compute_dtype, out_dtype=out_dtype)
    return jnp.transpose(out, (0, 3, 1, 2))


def _reference(x, w, b, g, scale_shift=None):
    """Pure-JAX reference mirroring the PyTorch module (for verification)."""
    out = lax.conv_general_dilated(
        x, w, window_strides=(1, 1), padding="SAME",
        dimension_numbers=("NCHW", "OIHW", "NCHW"))
    out = out + b[None, :, None, None]
    nrm = jnp.sqrt(jnp.sum(out * out, axis=1, keepdims=True))
    y = out / jnp.maximum(nrm, 1e-12)
    y = y * g * math.sqrt(float(x.shape[-1]))
    if scale_shift is not None:
        scale, shift = scale_shift
        y = y * (scale + 1.0) + shift
    return y * jax.nn.sigmoid(y)


if __name__ == "__main__":
    N, Cin, Cout, H, W = 2, 4, 8, 16, 16

    key = jax.random.PRNGKey(0)
    kx, kw, kb, ksc, ksh, k2 = jax.random.split(key, 6)

    x = jax.random.normal(kx, (N, Cin, H, W), jnp.float32)
    fan_in = Cin * 3 * 3
    bound = 1.0 / math.sqrt(fan_in)
    weight = jax.random.uniform(kw, (Cout, Cin, 3, 3), jnp.float32, -bound, bound)
    bias = jax.random.uniform(kb, (Cout,), jnp.float32, -bound, bound)
    g = jnp.ones((1, Cout, 1, 1), jnp.float32)
    scale = jax.random.normal(ksc, (N, Cout, 1, 1), jnp.float32) * 0.1
    shift = jax.random.normal(ksh, (N, Cout, 1, 1), jnp.float32) * 0.1

    # 1) exactness: f32 path (small-Cin fat-K conv, 2 row strips, scale_shift)
    out = jax.block_until_ready(
        block_forward(x, weight, bias, g, (scale, shift), compute_dtype=jnp.float32))
    ref = _reference(x, weight, bias, g, (scale, shift))
    assert out.shape == (N, Cout, H, W) and out.dtype == jnp.float32
    assert jnp.allclose(out, ref, atol=1e-4, rtol=1e-4), \
        float(jnp.max(jnp.abs(out - ref)))

    # 2) exactness: f32 path, no scale_shift (no-scale-shift kernel variant)
    out2 = jax.block_until_ready(
        block_forward(x, weight, bias, g, None, compute_dtype=jnp.float32))
    ref2 = _reference(x, weight, bias, g, None)
    assert jnp.allclose(out2, ref2, atol=1e-4, rtol=1e-4), \
        float(jnp.max(jnp.abs(out2 - ref2)))

    # 3) exactness: f32 path with Cin >= 32 (exercises the 9-tap accumulating conv)
    N3, Ci3, Co3, H3, W3 = 1, 32, 16, 16, 8
    ka, kb3, kc, kd, ke, kf = jax.random.split(k2, 6)
    x3 = jax.random.normal(ka, (N3, Ci3, H3, W3), jnp.float32)
    bound3 = 1.0 / math.sqrt(Ci3 * 9)
    w3 = jax.random.uniform(kb3, (Co3, Ci3, 3, 3), jnp.float32, -bound3, bound3)
    b3 = jax.random.uniform(kc, (Co3,), jnp.float32, -bound3, bound3)
    g3 = 1.0 + 0.1 * jax.random.normal(kd, (1, Co3, 1, 1), jnp.float32)
    sc3 = jax.random.normal(ke, (N3, Co3, 1, 1), jnp.float32) * 0.1
    sh3 = jax.random.normal(kf, (N3, Co3, 1, 1), jnp.float32) * 0.1
    out3 = jax.block_until_ready(
        block_forward(x3, w3, b3, g3, (sc3, sh3), compute_dtype=jnp.float32))
    ref3 = _reference(x3, w3, b3, g3, (sc3, sh3))
    assert jnp.allclose(out3, ref3, atol=2e-4, rtol=2e-4), \
        float(jnp.max(jnp.abs(out3 - ref3)))

    # 4) fast path: bf16 MXU inputs, bf16 epilogue + bf16 output; compare against
    #    the reference evaluated on bf16-quantized x / weight.
    out4 = jax.block_until_ready(block_forward(x, weight, bias, g, (scale, shift)))
    assert out4.dtype == jnp.bfloat16
    xq = x.astype(jnp.bfloat16).astype(jnp.float32)
    wq = weight.astype(jnp.bfloat16).astype(jnp.float32)
    ref4 = _reference(xq, wq, bias, g, (scale, shift))
    diff = jnp.abs(out4.astype(jnp.float32) - ref4)
    assert jnp.allclose(out4.astype(jnp.float32), ref4, atol=7.5e-2, rtol=5e-2), \
        float(jnp.max(diff))

    print("KERNEL_OK")
</pallas_src>

<mosaic_0001>
module attributes {stable_mosaic.version = 11 : i64} {
  func.func @_block_kernel(%arg0: i32, %arg1: i32, %arg2: memref<1x8x16x4xf32, #tpu.memory_space<vmem>>, %arg3: memref<1x1x16x4xf32, #tpu.memory_space<vmem>>, %arg4: memref<1x1x16x4xf32, #tpu.memory_space<vmem>>, %arg5: memref<36x8xf32, #tpu.memory_space<vmem>>, %arg6: memref<1x8xf32, #tpu.memory_space<vmem>>, %arg7: memref<1x8xf32, #tpu.memory_space<vmem>>, %arg8: memref<1x2x8xf32, #tpu.memory_space<vmem>>, %arg9: memref<1x8x16x8xf32, #tpu.memory_space<vmem>>, %arg10: memref<10x18x4xf32, #tpu.memory_space<vmem>>) attributes {dimension_semantics = [#tpu.dimension_semantics<parallel>, #tpu.dimension_semantics<parallel>], iteration_bounds = array<i64: 2, 2>, scalar_prefetch = 0 : i64, scratch_operands = 1 : i64, tpu.core_type = #tpu.core_type<tc>, window_params = [{transform_indices = @transform_0, window_bounds = array<i64: 1, 8, 16, 4>}, {transform_indices = @transform_1, window_bounds = array<i64: 1, 1, 16, 4>}, {transform_indices = @transform_2, window_bounds = array<i64: 1, 1, 16, 4>}, {pipeline_mode = #tpu.pipeline_mode<synchronous>, transform_indices = @transform_3, window_bounds = array<i64: 36, 8>}, {pipeline_mode = #tpu.pipeline_mode<synchronous>, transform_indices = @transform_4, window_bounds = array<i64: 1, 8>}, {pipeline_mode = #tpu.pipeline_mode<synchronous>, transform_indices = @transform_5, window_bounds = array<i64: 1, 8>}, {transform_indices = @transform_6, window_bounds = array<i64: 1, 2, 8>}, {transform_indices = @transform_7, window_bounds = array<i64: 1, 8, 16, 8>}]} {
    %cst = arith.constant 0.000000e+00 : f32
    %0 = vector.broadcast %cst : f32 to vector<10x1x4xf32>
    %c0 = arith.constant 0 : index
    %c0_0 = arith.constant 0 : index
    %c0_1 = arith.constant 0 : index
    %1 = vector.load %arg10[%c0, %c0_0, %c0_1] : memref<10x18x4xf32, #tpu.memory_space<vmem>>, vector<10x1x4xf32>
    tpu.vector_store %arg10[%c0, %c0_0, %c0_1], %0 {strides = array<i32>} : memref<10x18x4xf32, #tpu.memory_space<vmem>>, vector<10x1x4xf32>,
    %cst_2 = arith.constant 0.000000e+00 : f32
    %2 = vector.broadcast %cst_2 : f32 to vector<10x1x4xf32>
    %c0_3 = arith.constant 0 : index
    %c17 = arith.constant 17 : index
    %c0_4 = arith.constant 0 : index
    %3 = vector.load %arg10[%c0_3, %c17, %c0_4] : memref<10x18x4xf32, #tpu.memory_space<vmem>>, vector<10x1x4xf32>
    tpu.vector_store %arg10[%c0_3, %c17, %c0_4], %2 {strides = array<i32>} : memref<10x18x4xf32, #tpu.memory_space<vmem>>, vector<10x1x4xf32>,
    %c0_5 = arith.constant 0 : index
    %c0_6 = arith.constant 0 : index
    %c0_7 = arith.constant 0 : index
    %c0_8 = arith.constant 0 : index
    %4 = vector.load %arg2[%c0_5, %c0_6, %c0_7, %c0_8] : memref<1x8x16x4xf32, #tpu.memory_space<vmem>>, vector<1x8x16x4xf32>
    %5 = vector.shape_cast %4 : vector<1x8x16x4xf32> to vector<8x16x4xf32>
    %c1 = arith.constant 1 : index
    %c1_9 = arith.constant 1 : index
    %c0_10 = arith.constant 0 : index
    %6 = vector.load %arg10[%c1, %c1_9, %c0_10] : memref<10x18x4xf32, #tpu.memory_space<vmem>>, vector<8x16x4xf32>
    tpu.vector_store %arg10[%c1, %c1_9, %c0_10], %5 {strides = array<i32>} : memref<10x18x4xf32, #tpu.memory_space<vmem>>, vector<8x16x4xf32>,
    %c0_11 = arith.constant 0 : index
    %c0_12 = arith.constant 0 : index
    %c0_13 = arith.constant 0 : index
    %c0_14 = arith.constant 0 : index
    %7 = vector.load %arg3[%c0_11, %c0_12, %c0_13, %c0_14] : memref<1x1x16x4xf32, #tpu.memory_space<vmem>>, vector<1x1x16x4xf32>
    %8 = vector.shape_cast %7 : vector<1x1x16x4xf32> to vector<16x4xf32>
    %c0_15 = arith.constant 0 : index
    %c0_16 = arith.constant 0 : index
    %c0_17 = arith.constant 0 : index
    %c0_18 = arith.constant 0 : index
    %9 = vector.load %arg4[%c0_15, %c0_16, %c0_17, %c0_18] : memref<1x1x16x4xf32, #tpu.memory_space<vmem>>, vector<1x1x16x4xf32>
    %10 = vector.shape_cast %9 : vector<1x1x16x4xf32> to vector<16x4xf32>
    %c0_i32 = arith.constant 0 : i32
    %11 = arith.cmpi sgt, %arg1, %c0_i32 : i32
    %cst_19 = arith.constant 0.000000e+00 : f32
    %12 = vector.broadcast %cst_19 : f32 to vector<16x4xf32>
    %13 = arith.select %11, %8, %12 : vector<16x4xf32>
    %c0_20 = arith.constant 0 : index
    %c1_21 = arith.constant 1 : index
    %c0_22 = arith.constant 0 : index
    %14 = vector.load %arg10[%c0_20, %c1_21, %c0_22] : memref<10x18x4xf32, #tpu.memory_space<vmem>>, vector<1x16x4xf32>
    %15 = vector.shape_cast %14 : vector<1x16x4xf32> to vector<16x4xf32>
    %16 = vector.shape_cast %13 : vector<16x4xf32> to vector<1x16x4xf32>
    tpu.vector_store %arg10[%c0_20, %c1_21, %c0_22], %16 {strides = array<i32>} : memref<10x18x4xf32, #tpu.memory_space<vmem>>, vector<1x16x4xf32>,
    %c1_i32 = arith.constant 1 : i32
    %17 = arith.cmpi slt, %arg1, %c1_i32 : i32
    %cst_23 = arith.constant 0.000000e+00 : f32
    %18 = vector.broadcast %cst_23 : f32 to vector<16x4xf32>
    %19 = arith.select %17, %10, %18 : vector<16x4xf32>
    %c9 = arith.constant 9 : index
    %c1_24 = arith.constant 1 : index
    %c0_25 = arith.constant 0 : index
    %20 = vector.load %arg10[%c9, %c1_24, %c0_25] : memref<10x18x4xf32, #tpu.memory_space<vmem>>, vector<1x16x4xf32>
    %21 = vector.shape_cast %20 : vector<1x16x4xf32> to vector<16x4xf32>
    %22 = vector.shape_cast %19 : vector<16x4xf32> to vector<1x16x4xf32>
    tpu.vector_store %arg10[%c9, %c1_24, %c0_25], %22 {strides = array<i32>} : memref<10x18x4xf32, #tpu.memory_space<vmem>>, vector<1x16x4xf32>,
    %c0_26 = arith.constant 0 : index
    %c0_27 = arith.constant 0 : index
    %c0_28 = arith.constant 0 : index
    %23 = vector.load %arg10[%c0_26, %c0_27, %c0_28] : memref<10x18x4xf32, #tpu.memory_space<vmem>>, vector<10x18x4xf32>
    %24 = vector.extract_strided_slice %23 {offsets = [0, 0, 0], sizes = [8, 16, 4], strides = [1, 1, 1]} : vector<10x18x4xf32> to vector<8x16x4xf32>
    %25 = vector.shape_cast %24 : vector<8x16x4xf32> to vector<128x4xf32>
    %26 = vector.extract_strided_slice %23 {offsets = [0, 1, 0], sizes = [8, 16, 4], strides = [1, 1, 1]} : vector<10x18x4xf32> to vector<8x16x4xf32>
    %27 = vector.shape_cast %26 : vector<8x16x4xf32> to vector<128x4xf32>
    %28 = vector.extract_strided_slice %23 {offsets = [0, 2, 0], sizes = [8, 16, 4], strides = [1, 1, 1]} : vector<10x18x4xf32> to vector<8x16x4xf32>
    %29 = vector.shape_cast %28 : vector<8x16x4xf32> to vector<128x4xf32>
    %30 = vector.extract_strided_slice %23 {offsets = [1, 0, 0], sizes = [8, 16, 4], strides = [1, 1, 1]} : vector<10x18x4xf32> to vector<8x16x4xf32>
    %31 = vector.shape_cast %30 : vector<8x16x4xf32> to vector<128x4xf32>
    %32 = vector.extract_strided_slice %23 {offsets = [1, 1, 0], sizes = [8, 16, 4], strides = [1, 1, 1]} : vector<10x18x4xf32> to vector<8x16x4xf32>
    %33 = vector.shape_cast %32 : vector<8x16x4xf32> to vector<128x4xf32>
    %34 = vector.extract_strided_slice %23 {offsets = [1, 2, 0], sizes = [8, 16, 4], strides = [1, 1, 1]} : vector<10x18x4xf32> to vector<8x16x4xf32>
    %35 = vector.shape_cast %34 : vector<8x16x4xf32> to vector<128x4xf32>
    %36 = vector.extract_strided_slice %23 {offsets = [2, 0, 0], sizes = [8, 16, 4], strides = [1, 1, 1]} : vector<10x18x4xf32> to vector<8x16x4xf32>
    %37 = vector.shape_cast %36 : vector<8x16x4xf32> to vector<128x4xf32>
    %38 = vector.extract_strided_slice %23 {offsets = [2, 1, 0], sizes = [8, 16, 4], strides = [1, 1, 1]} : vector<10x18x4xf32> to vector<8x16x4xf32>
    %39 = vector.shape_cast %38 : vector<8x16x4xf32> to vector<128x4xf32>
    %40 = vector.extract_strided_slice %23 {offsets = [2, 2, 0], sizes = [8, 16, 4], strides = [1, 1, 1]} : vector<10x18x4xf32> to vector<8x16x4xf32>
    %41 = vector.shape_cast %40 : vector<8x16x4xf32> to vector<128x4xf32>
    %42 = tpu.concatenate %25, %27, %29, %31, %33, %35, %37, %39, %41 in 1 : vector<128x4xf32>, vector<128x4xf32>, vector<128x4xf32>, vector<128x4xf32>, vector<128x4xf32>, vector<128x4xf32>, vector<128x4xf32>, vector<128x4xf32>, vector<128x4xf32> -> vector<128x36xf32>
    %c0_29 = arith.constant 0 : index
    %c0_30 = arith.constant 0 : index
    %43 = vector.load %arg5[%c0_29, %c0_30] : memref<36x8xf32, #tpu.memory_space<vmem>>, vector<36x8xf32>
    %cst_31 = arith.constant dense<0.000000e+00> : vector<128x8xf32>
    %44 = tpu.matmul %42, %43, %cst_31 {dimension_numbers = #tpu.dot_dimension_numbers<[1], [0], [0], [1], [0, 0, 1, 1], [], []>} : vector<128x36xf32>, vector<36x8xf32>, vector<128x8xf32> -> vector<128x8xf32>
    %c0_32 = arith.constant 0 : index
    %c0_33 = arith.constant 0 : index
    %45 = vector.load %arg6[%c0_32, %c0_33] : memref<1x8xf32, #tpu.memory_space<vmem>>, vector<1x8xf32>
    %46 = vector.broadcast %45 : vector<1x8xf32> to vector<128x8xf32>
    %47 = arith.addf %44, %46 : vector<128x8xf32>
    %48 = arith.mulf %47, %47 : vector<128x8xf32>
    %cst_34 = arith.constant dense<0.000000e+00> : vector<128xf32>
    %49 = vector.multi_reduction <add>, %48, %cst_34 [1] : vector<128x8xf32> to vector<128xf32>
    %50 = vector.shape_cast %49 : vector<128xf32> to vector<128x1xf32>
    %cst_35 = arith.constant 1.000000e-24 : f32
    %51 = vector.broadcast %cst_35 : f32 to vector<128x1xf32>
    %52 = arith.maximumf %50, %51 : vector<128x1xf32>
    %53 = math.rsqrt %52 : vector<128x1xf32>
    %54 = vector.broadcast %53 : vector<128x1xf32> to vector<128x8xf32>
    %55 = arith.mulf %47, %54 : vector<128x8xf32>
    %c0_36 = arith.constant 0 : index
    %c0_37 = arith.constant 0 : index
    %56 = vector.load %arg7[%c0_36, %c0_37] : memref<1x8xf32, #tpu.memory_space<vmem>>, vector<1x8xf32>
    %57 = vector.broadcast %56 : vector<1x8xf32> to vector<128x8xf32>
    %58 = arith.mulf %55, %57 : vector<128x8xf32>
    %c0_38 = arith.constant 0 : index
    %c0_39 = arith.constant 0 : index
    %c0_40 = arith.constant 0 : index
    %59 = vector.load %arg8[%c0_38, %c0_39, %c0_40] : memref<1x2x8xf32, #tpu.memory_space<vmem>>, vector<1x2x8xf32>
    %60 = vector.shape_cast %59 : vector<1x2x8xf32> to vector<2x8xf32>
    %61 = vector.extract_strided_slice %60 {offsets = [0, 0], sizes = [1, 8], strides = [1, 1]} : vector<2x8xf32> to vector<1x8xf32>
    %62 = vector.broadcast %61 : vector<1x8xf32> to vector<128x8xf32>
    %63 = arith.mulf %58, %62 : vector<128x8xf32>
    %64 = vector.extract_strided_slice %60 {offsets = [1, 0], sizes = [1, 8], strides = [1, 1]} : vector<2x8xf32> to vector<1x8xf32>
    %65 = vector.broadcast %64 : vector<1x8xf32> to vector<128x8xf32>
    %66 = arith.addf %63, %65 : vector<128x8xf32>
    %67 = arith.negf %66 : vector<128x8xf32>
    %68 = math.exp %67 : vector<128x8xf32>
    %cst_41 = arith.constant 1.000000e+00 : f32
    %69 = vector.broadcast %cst_41 : f32 to vector<128x8xf32>
    %70 = arith.addf %69, %68 : vector<128x8xf32>
    %71 = arith.divf %69, %70 : vector<128x8xf32>
    %72 = arith.mulf %66, %71 : vector<128x8xf32>
    %73 = vector.shape_cast %72 : vector<128x8xf32> to vector<8x16x8xf32>
    %c0_42 = arith.constant 0 : index
    %c0_43 = arith.constant 0 : index
    %c0_44 = arith.constant 0 : index
    %c0_45 = arith.constant 0 : index
    %74 = vector.load %arg9[%c0_42, %c0_43, %c0_44, %c0_45] : memref<1x8x16x8xf32, #tpu.memory_space<vmem>>, vector<1x8x16x8xf32>
    %75 = vector.shape_cast %74 : vector<1x8x16x8xf32> to vector<8x16x8xf32>
    %76 = vector.shape_cast %73 : vector<8x16x8xf32> to vector<1x8x16x8xf32>
    tpu.vector_store %arg9[%c0_42, %c0_43, %c0_44, %c0_45], %76 {strides = array<i32>} : memref<1x8x16x8xf32, #tpu.memory_space<vmem>>, vector<1x8x16x8xf32>,
    return
  }
  func.func @transform_0(%arg0: i32, %arg1: i32) -> (i32, i32, i32, i32) {
    %c0_i32 = arith.constant 0 : i32
    %c0_i32_0 = arith.constant 0 : i32
    %c0_i32_1 = arith.constant 0 : i32
    return %arg0, %arg1, %c0_i32, %c0_i32_0 : i32, i32, i32, i32
  }
  func.func @transform_1(%arg0: i32, %arg1: i32) -> (i32, i32, i32, i32) {
    %c8_i32 = arith.constant 8 : i32
    %0 = arith.muli %arg1, %c8_i32 : i32
    %c1_i32 = arith.constant 1 : i32
    %1 = arith.subi %0, %c1_i32 : i32
    %c0_i32 = arith.constant 0 : i32
    %2 = arith.maxsi %1, %c0_i32 : i32
    %c0_i32_0 = arith.constant 0 : i32
    %c0_i32_1 = arith.constant 0 : i32
    %c0_i32_2 = arith.constant 0 : i32
    return %arg0, %2, %c0_i32_0, %c0_i32_1 : i32, i32, i32, i32
  }
  func.func @transform_2(%arg0: i32, %arg1: i32) -> (i32, i32, i32, i32) {
    %c1_i32 = arith.constant 1 : i32
    %0 = arith.addi %arg1, %c1_i32 : i32
    %c8_i32 = arith.constant 8 : i32
    %1 = arith.muli %0, %c8_i32 : i32
    %c15_i32 = arith.constant 15 : i32
    %2 = arith.minsi %1, %c15_i32 : i32
    %c0_i32 = arith.constant 0 : i32
    %c0_i32_0 = arith.constant 0 : i32
    %c0_i32_1 = arith.constant 0 : i32
    return %arg0, %2, %c0_i32, %c0_i32_0 : i32, i32, i32, i32
  }
  func.func @transform_3(%arg0: i32, %arg1: i32) -> (i32, i32) {
    %c0_i32 = arith.constant 0 : i32
    %c0_i32_0 = arith.constant 0 : i32
    %c0_i32_1 = arith.constant 0 : i32
    return %c0_i32, %c0_i32_0 : i32, i32
  }
  func.func @transform_4(%arg0: i32, %arg1: i32) -> (i32, i32) {
    %c0_i32 = arith.constant 0 : i32
    %c0_i32_0 = arith.constant 0 : i32
    %c0_i32_1 = arith.constant 0 : i32
    return %c0_i32, %c0_i32_0 : i32, i32
  }
  func.func @transform_5(%arg0: i32, %arg1: i32) -> (i32, i32) {
    %c0_i32 = arith.constant 0 : i32
    %c0_i32_0 = arith.constant 0 : i32
    %c0_i32_1 = arith.constant 0 : i32
    return %c0_i32, %c0_i32_0 : i32, i32
  }
  func.func @transform_6(%arg0: i32, %arg1: i32) -> (i32, i32, i32) {
    %c0_i32 = arith.constant 0 : i32
    %c0_i32_0 = arith.constant 0 : i32
    %c0_i32_1 = arith.constant 0 : i32
    return %arg0, %c0_i32, %c0_i32_0 : i32, i32, i32
  }
  func.func @transform_7(%arg0: i32, %arg1: i32) -> (i32, i32, i32, i32) {
    %c0_i32 = arith.constant 0 : i32
    %c0_i32_0 = arith.constant 0 : i32
    %c0_i32_1 = arith.constant 0 : i32
    return %arg0, %arg1, %c0_i32, %c0_i32_0 : i32, i32, i32, i32
  }
}

</mosaic_0001>

<bundles_post_ra>
// kernel: tpu_custom_call.1
= control target key start
LH: loop header
LB: loop body
LE: loop exit
PB: predicated region body
PF: predicated region fallthrough
CT: control target
= control target key end

     0   :  { %s2281_s24 = smov 0   ;;  %s2283_s25 = smov 0   ;;  %s3321_s0 = inlined_call_operand.vmem [shape: f32[2,16,16,4], index: 0, kind: input, shape index: {}]   ;;  %s3322_s1 = inlined_call_operand.vmem [shape: f32[2,16,16,4], index: 1, kind: input, shape index: {}]   ;;  %s3323_s2 = inlined_call_operand.vmem [shape: f32[2,16,16,4], index: 2, kind: input, shape index: {}]   ;;  %s3324_s3 = inlined_call_operand.vmem [shape: f32[36,8], index: 3, kind: input, shape index: {}]   ;;  %s3325_s4 = inlined_call_operand.vmem [shape: f32[1,8], index: 4, kind: input, shape index: {}]   ;;  %s3326_s5 = inlined_call_operand.vmem [shape: f32[1,8], index: 5, kind: input, shape index: {}]   ;;  %s3327_s6 = inlined_call_operand.vmem [shape: f32[2,2,8], index: 6, kind: input, shape index: {}]   ;;  %s3328_s7 = inlined_call_operand.vmem [shape: f32[2,16,16,8], index: 7, kind: output, shape index: {}]  }
   0x1   :  { %s2285_s26 = smov 0   ;;  %s2287_s27 = smov 0  }
   0x2   :  { %s2289_s28 = smov 0  }
   0x3 LB: > { %s26_s29 = sadd.s32 1, %s2222_s26  ;;  %s29_s30 = sadd.s32 1, %s2226_s27  ;;  %s2230_s28 = sphi %s2289_s28, %s17_s28   ;;  %s2226_s27 = sphi %s2287_s27, %s3359_s27   ;;  %s2222_s26 = sphi %s2285_s26, %s3358_s26   ;;  %s2218_s25 = sphi %s2283_s25, %s3357_s25   ;;  %s2214_s24 = sphi %s2281_s24, %s3356_s24  }
   0x4   : > { %p27_p0 = scmp.ge.s32.totalorder %s26_s29, 2  ;;  %p1898_p1 = scmp.ge.s32.totalorder %s2230_s28, 1 }
   0x5   : > { %p332_p2 = scmp.lt.s32.totalorder %s2230_s28, 5 }
   0x6   : > { %s3361_s29 = smov (%p27_p0, %s26_s29), 0  ;;  %s3363_s30 = smov (!%p27_p0, %s29_s30), %s2226_s27 }
   0x7   : > { %p333_p3 = pnand %p1898_p1, %p332_p2  ;;  %p31_p4 = scmp.ge.s32.totalorder %s3363_s30, 2 }
   0x9   : > { %s3365_s30 = smov (%p31_p4, %s3363_s30), 0  ;;  %336 = sbr.rel (%p333_p3) target bundleno = 803 (0x323), region = 48 }
   0xe   : > { %s2316_s8 = sshll.u32 %s2214_s24, 3  ;;  %p405_p5 = scmp.lt.s32.totalorder %s2218_s25, 1  ;;  %vm464_vm0 = vcmask 24576   ;;  %v2232_v0 = vmov 0.0   ;;  %vm502_vm1 = vcmask 31744   ;;  %vm594_vm2 = vcmask 1046528  }
   0xf   : > { %p407_p6 = scmp.lt.s32.totalorder %s2316_s8, 15  ;;  %470 = vst.msk [vmem:[#allocation2 + $0x78] sm:$0x1] %vm464_vm0, %v2232_v0  ;;  %465 = vst.msk [vmem:[#allocation2] sm:$0x1] %vm464_vm0, %v2232_v0  ;;  %s1904_s17 = sadd.s32 4294967295, %s2316_s8 }
  0x10   : > { %466 = vst.msk [vmem:[#allocation2 + $0x18] sm:$0x1] %vm464_vm0, %v2232_v0  ;;  %467 = vst.msk [vmem:[#allocation2 + $0x30] sm:$0x1] %vm464_vm0, %v2232_v0  ;;  %s3367_s25 = smov (!%p405_p5, %s2218_s25), 1  ;;  %p523_p7 = scmp.gt.s32.totalorder %s2214_s24, 0 }
  0x11   : > { %468 = vst.msk [vmem:[#allocation2 + $0x48] sm:$0x1] %vm464_vm0, %v2232_v0  ;;  %469 = vst.msk [vmem:[#allocation2 + $0x60] sm:$0x1] %vm464_vm0, %v2232_v0  ;;  %s408_s9 = scalar_select %p407_p6, %s2316_s8, 15  ;;  %vm635_vm3 = vcmask 1045504  }
  0x12   : > { %471 = vst.msk [vmem:[#allocation2 + $0x90] sm:$0x1] %vm464_vm0, %v2232_v0  ;;  %472 = vst.msk [vmem:[#allocation2 + $0xa8] sm:$0x1] %vm464_vm0, %v2232_v0  ;;  %s2349_s10 = sshll.u32 %s3367_s25, 5  ;;  %p417_p8 = scmp.gt.s32.totalorder %s1904_s17, 0 }
  0x13   : > { %473 = vst.msk [vmem:[#allocation2 + $0xc0] sm:$0x1] %vm464_vm0, %v2232_v0  ;;  %474 = vst.msk [vmem:[#allocation2 + $0xd8] sm:$0x1] %vm464_vm0, %v2232_v0  ;;  %s1900_s11 = sshll.u32 %s408_s9, 1  ;;  %p1905_p9 = scmp.lt.s32.totalorder %s1904_s17, 15 }
  0x14   : > { %475 = vst.msk [vmem:[#allocation2 + $0x11] sm:$0x1] %vm464_vm0, %v2232_v0  ;;  %476 = vst.msk [vmem:[#allocation2 + $0x29] sm:$0x1] %vm464_vm0, %v2232_v0  ;;  %s2352_s12 = sadd.s32 %s2349_s10, %s1900_s11  ;;  %s3332_s22 = smov 12   ;;  %vm1282_vm4 = vcmask 1043456  }
  0x15   : > { %477 = vst.msk [vmem:[#allocation2 + $0x41] sm:$0x1] %vm464_vm0, %v2232_v0  ;;  %478 = vst.msk [vmem:[#allocation2 + $0x59] sm:$0x1] %vm464_vm0, %v2232_v0  ;;  %s3329_s13 = sshll.u32 %s2352_s12, 3  ;;  %s2234_s15 = smov 4  }
  0x16   : > { %479 = vst.msk [vmem:[#allocation2 + $0x71] sm:$0x1] %vm464_vm0, %v2232_v0  ;;  %480 = vst.msk [vmem:[#allocation2 + $0x89] sm:$0x1] %vm464_vm0, %v2232_v0  ;;  %s2360_s16 = scalar_lea.vmem %s3321_s0, %s3329_s13  ;;  %s2240_s11 = smov 32   ;;  %vm1102_vm5 = vcmask 64512  }
  0x17   : > { %481 = vst.msk [vmem:[#allocation2 + $0xa1] sm:$0x1] %vm464_vm0, %v2232_v0  ;;  %482 = vst.msk [vmem:[#allocation2 + $0xb9] sm:$0x1] %vm464_vm0, %v2232_v0  ;;  %v493_v1 = vld [vmem:[%s2360_s16 + $0x40] sm:$0xff]  ;;  %v494_v3 = vld [vmem:[%s2360_s16 + $0x48] sm:$0xff] }
  0x18   : > { %483 = vst.msk [vmem:[#allocation2 + $0xd1] sm:$0x1] %vm464_vm0, %v2232_v0  ;;  %484 = vst.msk [vmem:[#allocation2 + $0xe9] sm:$0x1] %vm464_vm0, %v2232_v0  ;;  %v485_v2 = vld [vmem:[%s2360_s16] sm:$0xff]  ;;  %v486_v4 = vld [vmem:[%s2360_s16 + $0x8] sm:$0xff] }
  0x19   : > { %511 = vst.msk [vmem:[#allocation2 + $0x79] sm:$0xff] %vm502_vm1, %v493_v1  ;;  %503 = vst.msk [vmem:[#allocation2 + $0x19] sm:$0xff] %vm502_vm1, %v485_v2  ;;  %v491_v5 = vld [vmem:[%s2360_s16 + $0x30] sm:$0xff]  ;;  %v492_v6 = vld [vmem:[%s2360_s16 + $0x38] sm:$0xff]  ;;  %s418_s18 = scalar_select %p417_p8, %s1904_s17, 0  ;;  %vm1119_vm6 = vcmask 97280  }
  0x1a   : > { %512 = vst.msk [vmem:[#allocation2 + $0x81] sm:$0xff] %vm502_vm1, %v494_v3  ;;  %504 = vst.msk [vmem:[#allocation2 + $0x21] sm:$0xff] %vm502_vm1, %v486_v4  ;;  %v495_v7 = vld [vmem:[%s2360_s16 + $0x50] sm:$0xff]  ;;  %v496_v9 = vld [vmem:[%s2360_s16 + $0x58] sm:$0xff]  ;;  %s2085_s19 = scalar_select %p523_p7, 255, 0 }
  0x1b   : > { %509 = vst.msk [vmem:[#allocation2 + $0x61] sm:$0xff] %vm502_vm1, %v491_v5  ;;  %510 = vst.msk [vmem:[#allocation2 + $0x69] sm:$0xff] %vm502_vm1, %v492_v6  ;;  %v487_v8 = vld [vmem:[%s2360_s16 + $0x10] sm:$0xff]  ;;  %v488_v10 = vld [vmem:[%s2360_s16 + $0x18] sm:$0xff]  ;;  %s3369_s18 = smov (!%p1905_p9, %s418_s18), 15  ;;  %s2235_s17 = smov 8  }
  0x1c   : > { %513 = vst.msk [vmem:[#allocation2 + $0x91] sm:$0xff] %vm502_vm1, %v495_v7  ;;  %505 = vst.msk [vmem:[#allocation2 + $0x31] sm:$0xff] %vm502_vm1, %v487_v8  ;;  %v497_v11 = vld [vmem:[%s2360_s16 + $0x60] sm:$0xff]  ;;  %v498_v13 = vld [vmem:[%s2360_s16 + $0x68] sm:$0xff]  ;;  %s1910_s20 = sshll.u32 %s3369_s18, 1  ;;  %s2236_s18 = smov 16  }
  0x1d   : > { %514 = vst.msk [vmem:[#allocation2 + $0x99] sm:$0xff] %vm502_vm1, %v496_v9  ;;  %v489_v12 = vld [vmem:[%s2360_s16 + $0x20] sm:$0xff]  ;;  %506 = vst.msk [vmem:[#allocation2 + $0x39] sm:$0xff] %vm502_vm1, %v488_v10  ;;  %v490_v14 = vld [vmem:[%s2360_s16 + $0x28] sm:$0xff]  ;;  %s425_s21 = sadd.s32 %s1910_s20, %s2349_s10  ;;  %s2238_s20 = smov 24   ;;  %vm1136_vm7 = vcmask 130048  }
  0x1e   : > { %515 = vst.msk [vmem:[#allocation2 + $0xa9] sm:$0xff] %vm502_vm1, %v497_v11  ;;  %507 = vst.msk [vmem:[#allocation2 + $0x49] sm:$0xff] %vm502_vm1, %v489_v12  ;;  %s1912_s23 = sshll.u32 %s425_s21, 3  ;;  %v499_v3 = vld [vmem:[%s2360_s16 + $0x70] sm:$0xff]  ;;  %v500_v8 = vld [vmem:[%s2360_s16 + $0x78] sm:$0xff]  ;;  %s3330_s16 = smov 28  }
  0x1f   : > { %516 = vst.msk [vmem:[#allocation2 + $0xb1] sm:$0xff] %vm502_vm1, %v498_v13  ;;  %508 = vst.msk [vmem:[#allocation2 + $0x51] sm:$0xff] %vm502_vm1, %v490_v14  ;;  %s427_s14 = scalar_lea.vmem %s3322_s1, %s1912_s23  ;;  %s1969_s13 = sadd.s32 8, %s2316_s8  ;;  %vm1153_vm8 = vcmask 162816   ;;  %vm1170_vm9 = vcmask 195584   ;;  %vm1187_vm10 = vcmask 228352  }
  0x20   : > { %v2395_v15 = vld [vmem:[#allocation2 + $0x78] sm:$0xff]  ;;  %v2086_v25 = vld [vmem:[%s427_s14] sm:%s2085_s19]  ;;  %v2089_v28 = vld [vmem:[%s427_s14 + $0x8] sm:%s2085_s19]  ;;  %s2237_s19 = smov 20   ;;  %517 = vst.msk [vmem:[#allocation2 + $0xc1] sm:$0xff] %vm502_vm1, %v499_v3  ;;  %p2581_p10 = scmp.lt.s32.totalorder %s1969_s13, 15 }
  0x21   : > { %v2397_v16 = vld [vmem:[#allocation2 + $0x18] sm:$0xff]  ;;  %814 = vrot.lane.b32.xlu1 %v2395_v15, %s3332_s22  ;;  %v2406_v19 = vld [vmem:[#allocation2 + $0x80] sm:$0xff]  ;;  %529 = vst.msk [vmem:[#allocation2 + $0x1] sm:$0xff] %vm502_vm1, %v2086_v25  ;;  %530 = vst.msk [vmem:[#allocation2 + $0x9] sm:$0xff] %vm502_vm1, %v2089_v28  ;;  %v620_v39 = vrot.slane %v2395_v15, 1  ;;  %v661_v57 = vrot.slane %v2395_v15, 2 }
  0x22   : > { %798 = vrot.lane.b32.xlu0 %v2397_v16, %s3332_s22  ;;  %v2404_v17 = vld [vmem:[#allocation2 + $0x68] sm:$0xff]  ;;  %v554_v18 = vld [vmem:[#allocation2 + $0x70] sm:$0x3]  ;;  %v2408_v20 = vld [vmem:[#allocation2 + $0x20] sm:$0xff]  ;;  %v600_v27 = vrot.slane %v2397_v16, 1  ;;  %v621_v40 = vrot.slane %v2406_v19, 1 }
  0x23   : > { %v616_v21 = vrot.slane %v2404_v17, 1  ;;  %v618_v22 = vrot.slane %v554_v18, 1  ;;  %v2411_v23 = vld [vmem:[#allocation2 + $0x60] sm:$0xff]  ;;  %v657_v26 = vrot.slane %v2404_v17, 2  ;;  %v601_v32 = vrot.slane %v2408_v20, 1  ;;  %v2508_v6 = vld [vmem:[#allocation2 + $0x90] sm:$0xff] }
  0x24   : > { %v615_v24 = vrot.slane %v2411_v23, 1  ;;  %v656_v31 = vrot.slane %v2411_v23, 2  ;;  %v659_v35 = vrot.slane %v554_v18, 2  ;;  %v2462_v47 = vsel %vm594_vm2, %v620_v39, %v621_v40  ;;  %v557_v53 = vld [vmem:[#allocation2 + $0x88] sm:$0x3]  ;;  %v2510_v7 = vld [vmem:[#allocation2 + $0x30] sm:$0xff] }
  0x25   : > { %816 = vrot.lane.b32.xlu1 %v2406_v19, %s3332_s22  ;;  %v2425_v29 = vsel %vm594_vm2, %v616_v21, %v618_v22  ;;  %v602_v34 = vsel %vm594_vm2, %v600_v27, %v601_v32  ;;  %v545_v54 = vld [vmem:[#allocation2 + $0x28] sm:$0x3]  ;;  %v623_v55 = vrot.slane %v557_v53, 1  ;;  %v662_v58 = vrot.slane %v2406_v19, 2  ;;  %518 = vst.msk [vmem:[#allocation2 + $0xc9] sm:$0xff] %vm502_vm1, %v500_v8  ;;  %v2521_v9 = vld [vmem:[#allocation2 + $0x98] sm:$0xff] }
  0x26   : > { %800 = vrot.lane.b32.xlu0 %v2408_v20, %s3332_s22  ;;  %v2428_v30 = vsel %vm594_vm2, %v615_v24, %v616_v21  ;;  %v2438_v33 = vsel %vm635_vm3, %v656_v31, %v657_v26  ;;  %v2452_v41 = vsel %vm635_vm3, %v657_v26, %v659_v35  ;;  %v603_v56 = vrot.slane %v545_v54, 1  ;;  %v2523_v10 = vld [vmem:[#allocation2 + $0x38] sm:$0xff]  ;;  %v2541_v22 = vld [vmem:[#allocation2 + $0xa0] sm:$0x3]  ;;  %s3371_s13 = smov (!%p2581_p10, %s1969_s13), 15  ;;  %p531_p11 = scmp.lt.s32.totalorder %s2214_s24, 1 }
  0x27   : > { %v2478_v59 = vsel %vm594_vm2, %v621_v40, %v623_v55  ;;  %v641_v61 = vrot.slane %v2397_v16, 2  ;;  %v642_v62 = vrot.slane %v2408_v20, 2  ;;  %v2487_v63 = vsel %vm635_vm3, %v661_v57, %v662_v58  ;;  %v2543_v24 = vld [vmem:[#allocation2 + $0x40] sm:$0x3]  ;;  %v1224_v39 = vld [vmem:[%s3324_s3 + $0x18] sm:$0xff]  ;;  %s3373_s13 = smov (!%p2581_p10, %s3371_s13), 15 }
  0x28   : > { %v2441_v36 = vld [vmem:[#allocation2] sm:$0xff]  ;;  %v2447_v38 = vld [vmem:[#allocation2 + $0x8] sm:$0xff]  ;;  %v542_v45 = vld [vmem:[#allocation2 + $0x10] sm:$0x3]  ;;  %v604_v60 = vsel %vm594_vm2, %v601_v32, %v603_v56  ;;  %v664_v1 = vrot.slane %v557_v53, 2  ;;  %v644_v2 = vrot.slane %v545_v54, 2 }
  0x29   : > { %720 = vrot.lane.b32.xlu1 %v2425_v29, %s2234_s15  ;;  %v595_v37 = vrot.slane %v2441_v36, 1  ;;  %v596_v42 = vrot.slane %v2447_v38, 1  ;;  %v636_v43 = vrot.slane %v2441_v36, 2  ;;  %v637_v44 = vrot.slane %v2447_v38, 2  ;;  %s1917_s8 = sshll.u32 %s3373_s13, 1  ;;  %v2616_v53 = vld [vmem:[#allocation2 + $0xa8] sm:$0xff] }
  0x2a   : > { %718 = vrot.lane.b32.xlu0 %v2428_v30, %s2234_s15  ;;  %v598_v49 = vrot.slane %v542_v45, 1  ;;  %v639_v50 = vrot.slane %v542_v45, 2  ;;  %v643_v0 = vsel %vm635_vm3, %v641_v61, %v642_v62  ;;  %v2502_v4 = vsel %vm635_vm3, %v662_v58, %v664_v1  ;;  %v1221_v45 = vld [vmem:[%s3324_s3] sm:$0xff]  ;;  %s442_s23 = sadd.s32 %s1917_s8, %s2349_s10  ;;  %3339 = vst [vmem:[#allocation3_spill] sm:$0xff] %v2616_v53  ;;  %v2618_v54 = vld [vmem:[#allocation2 + $0x48] sm:$0xff]  ;;  %s3343_s24 = smov 12  }
  0x2b   : > { %v597_v46 = vsel %vm594_vm2, %v595_v37, %v596_v42  ;;  %v638_v48 = vsel %vm635_vm3, %v636_v43, %v637_v44  ;;  %v645_v5 = vsel %vm635_vm3, %v642_v62, %v644_v2  ;;  %v625_v11 = vrot.slane %v2508_v6, 1  ;;  %v1225_v37 = vld [vmem:[%s3324_s3 + $0x20] sm:$0xf]  ;;  %v1223_v43 = vld [vmem:[%s3324_s3 + $0x10] sm:$0xff]  ;;  %s1919_s9 = sshll.u32 %s442_s23, 3  ;;  %3340 = vst [vmem:[#allocation4_spill] sm:$0xff] %v2618_v54 }
  0x2c   : > { %v599_v51 = vsel %vm594_vm2, %v596_v42, %v598_v49  ;;  %v640_v52 = vsel %vm635_vm3, %v637_v44, %v639_v50  ;;  %v626_v12 = vrot.slane %v2521_v9, 1  ;;  %v605_v13 = vrot.slane %v2510_v7, 1  ;;  %1991 = vmatprep.subr.msk.mxu0 %vm1282_vm4, %v1225_v37  ;;  %2025 = vmatprep.subr.msk.mxu1 %vm1282_vm4, %v1225_v37  ;;  %v1222_v44 = vld [vmem:[%s3324_s3 + $0x8] sm:$0xff]  ;;  %v2638_v62 = vld [vmem:[#allocation2 + $0xb0] sm:$0xff]  ;;  %s3344_s10 = smov 28  }
  0x2d   : > { %766 = vrot.lane.b32.xlu1 %v2438_v33, %s2235_s17  ;;  %v606_v14 = vrot.slane %v2523_v10, 1  ;;  %v628_v25 = vrot.slane %v2541_v22, 1  ;;  %v608_v26 = vrot.slane %v2543_v24, 1  ;;  %v666_v27 = vrot.slane %v2508_v6, 2  ;;  %1992 = vmatpush3.msk.msra.mxu0 %vm1282_vm4, %v1225_v37  ;;  %3341 = vst [vmem:[#allocation5_spill] sm:$0xff] %v2638_v62 }
  0x2e   : > { %846 = vrot.lane.b32.xlu0 %v602_v34, %s2236_s18  ;;  %v627_v18 = vsel %vm594_vm2, %v625_v11, %v626_v12  ;;  %v667_v28 = vrot.slane %v2521_v9, 2  ;;  %v646_v31 = vrot.slane %v2510_v7, 2  ;;  %v647_v35 = vrot.slane %v2523_v10, 2  ;;  %2030 = vmatpush3.msk.msra.mxu1 %vm1282_vm4, %v1225_v37 }
  0x2f   : > { %v607_v21 = vsel %vm594_vm2, %v605_v13, %v606_v14  ;;  %v629_v32 = vsel %vm594_vm2, %v626_v12, %v628_v25  ;;  %1993 = vmatprep.subr.mxu0 %v1224_v39  ;;  %2026 = vmatprep.subr.mxu1 %v1224_v39  ;;  %v630_v1 = vrot.slane %v2616_v53, 1  ;;  %v631_v2 = vrot.slane %v2638_v62, 1  ;;  %v551_v25 = vld [vmem:[#allocation2 + $0x58] sm:$0x3] }
  0x30   : > { %v668_v40 = vsel %vm635_vm3, %v666_v27, %v667_v28  ;;  %v648_v42 = vsel %vm635_vm3, %v646_v31, %v647_v35  ;;  %1994 = vmatpush3.msra.mxu0 %v1224_v39  ;;  %2031 = vmatpush3.msra.mxu1 %v1224_v39  ;;  %v610_v3 = vrot.slane %v2618_v54, 1  ;;  %v613_v27 = vrot.slane %v551_v25, 1 }
  0x31   : > { %768 = vrot.lane.b32.xlu1 %v2452_v41, %s2235_s17  ;;  %1995 = vmatprep.subr.mxu0 %v1223_v43  ;;  %v632_v12 = vsel %vm594_vm2, %v630_v1, %v631_v2  ;;  %v651_v39 = vrot.slane %v2618_v54, 2  ;;  %vm1204_vm11 = vcmask 261120   ;;  %vm1233_vm12 = vcmask 293888  }
  0x32   : > { %702 = vrot.lane.b32.xlu0 %v597_v46, %s2234_s15  ;;  %2027 = vmatprep.subr.mxu1 %v1223_v43  ;;  %v669_v46 = vrot.slane %v2541_v22, 2 }
  0x33   : > { %1996 = vmatpush3.msra.mxu0 %v1223_v43  ;;  %2032 = vmatpush3.msra.mxu1 %v1223_v43 }
  0x34   : > { %1997 = vmatprep.subr.mxu0 %v1222_v44  ;;  %2028 = vmatprep.subr.mxu1 %v1222_v44  ;;  %v670_v49 = vsel %vm635_vm3, %v667_v28, %v669_v46 }
  0x35   : > { %862 = vrot.lane.b32.xlu1 %v2462_v47, %s2236_s18  ;;  %1998 = vmatpush3.msra.mxu0 %v1222_v44 }
  0x36   : > { %750 = vrot.lane.b32.xlu0 %v638_v48, %s2235_s17  ;;  %2033 = vmatpush3.msra.mxu1 %v1222_v44  ;;  %v649_v48 = vrot.slane %v2543_v24, 2  ;;  %v563_v24 = vld [vmem:[#allocation2 + $0xb8] sm:$0x3] }
  0x37   : > { %1999 = vmatprep.subr.mxu0 %v1221_v45  ;;  %2029 = vmatprep.subr.mxu1 %v1221_v45  ;;  %v674_v1 = vrot.slane %v563_v24, 2 }
  0x38   : > { %2000 = vmatpush3.msra.mxu0 %v1221_v45  ;;  %2034 = vmatpush3.msra.mxu1 %v1221_v45  ;;  %v650_v50 = vsel %vm635_vm3, %v647_v35, %v649_v48 }
  0x39   : > { %704 = vrot.lane.b32.xlu1 %v599_v51, %s2234_s15 }
  0x3a   : > { %752 = vrot.lane.b32.xlu0 %v640_v52, %s2235_s17 }
  0x3d   : > { %722 = vrot.lane.b32.xlu1 %v2462_v47, %s2234_s15 }
  0x3e   : > { %706 = vrot.lane.b32.xlu0 %v602_v34, %s2234_s15  ;;  %v609_v34 = vsel %vm594_vm2, %v606_v14, %v608_v26  ;;  %v633_v26 = vrot.slane %v563_v24, 1 }
  0x40   : > { %v634_v35 = vsel %vm594_vm2, %v631_v2, %v633_v26  ;;  %v654_v2 = vrot.slane %v551_v25, 2 }
  0x41   : > { %864 = vrot.lane.b32.xlu1 %v2478_v59, %s2236_s18 }
  0x42   : > { %848 = vrot.lane.b32.xlu0 %v604_v60, %s2236_s18 }
  0x45   : > { %910 = vrot.lane.b32.xlu1 %v2487_v63, %s2237_s19 }
  0x46   : > { %894 = vrot.lane.b32.xlu0 %v643_v0, %s2237_s19 }
  0x49   : > { %724 = vrot.lane.b32.xlu1 %v2478_v59, %s2234_s15 }
  0x4a   : > { %708 = vrot.lane.b32.xlu0 %v604_v60, %s2234_s15 }
  0x4d   : > { %770 = vrot.lane.b32.xlu1 %v2487_v63, %s2235_s17 }
  0x4e   : > { %754 = vrot.lane.b32.xlu0 %v643_v0, %s2235_s17  ;;  %v2640_v0 = vld [vmem:[#allocation2 + $0x50] sm:$0xff] }
  0x4f   : > { %3342 = vst [vmem:[#allocation6_spill] sm:$0xff] %v2640_v0 }
  0x51   : > { %912 = vrot.lane.b32.xlu1 %v2502_v4, %s2237_s19 }
  0x52   : > { %896 = vrot.lane.b32.xlu0 %v645_v5, %s2237_s19 }
  0x55   : > { %958 = vrot.lane.b32.xlu1 %v2508_v6, %s2238_s20 }
  0x56   : > { %942 = vrot.lane.b32.xlu0 %v2510_v7, %s2238_s20 }
  0x59   : > { %772 = vrot.lane.b32.xlu1 %v2502_v4, %s2235_s17 }
  0x5a   : > { %756 = vrot.lane.b32.xlu0 %v645_v5, %s2235_s17  ;;  %v611_v5 = vrot.slane %v2640_v0, 1 }
  0x5c   : > { %v612_v13 = vsel %vm594_vm2, %v610_v3, %v611_v5  ;;  %v614_v37 = vsel %vm594_vm2, %v611_v5, %v613_v27 }
  0x5d   : > { %818 = vrot.lane.b32.xlu1 %v2508_v6, %s3332_s22 }
  0x5e   : > { %802 = vrot.lane.b32.xlu0 %v2510_v7, %s3332_s22 }
  0x61   : > { %960 = vrot.lane.b32.xlu1 %v2521_v9, %s2238_s20 }
  0x62   : > { %944 = vrot.lane.b32.xlu0 %v2523_v10, %s2238_s20 }
  0x65   : > { %1006 = vrot.lane.b32.xlu1 %v627_v18, %s3330_s16 }
  0x66   : > { %990 = vrot.lane.b32.xlu0 %v607_v21, %s3330_s16 }
  0x69   : > { %820 = vrot.lane.b32.xlu1 %v2521_v9, %s3332_s22 }
  0x6a   : > { %804 = vrot.lane.b32.xlu0 %v2523_v10, %s3332_s22  ;;  %s444_s22 = scalar_lea.vmem %s3323_s2, %s1919_s9 }
  0x6d   : > { %866 = vrot.lane.b32.xlu1 %v627_v18, %s2236_s18 }
  0x6e   : > { %850 = vrot.lane.b32.xlu0 %v607_v21, %s2236_s18 }
  0x71   : > { %1008 = vrot.lane.b32.xlu1 %v629_v32, %s3330_s16 }
  0x72   : > { %992 = vrot.lane.b32.xlu0 %v609_v34, %s3330_s16  ;;  %s2091_s16 = scalar_select %p531_p11, 255, 0 }
  0x74   : > { %v2092_v51 = vld [vmem:[%s444_s22] sm:%s2091_s16]  ;;  %v2095_v52 = vld [vmem:[%s444_s22 + $0x8] sm:%s2091_s16] }
  0x75   : > { %1054 = vrot.lane.b32.xlu1 %v668_v40, %s2240_s11  ;;  %538 = vst.msk [vmem:[#allocation2 + $0xd9] sm:$0xff] %vm502_vm1, %v2092_v51  ;;  %539 = vst.msk [vmem:[#allocation2 + $0xe1] sm:$0xff] %vm502_vm1, %v2095_v52 }
  0x76   : > { %1038 = vrot.lane.b32.xlu0 %v648_v42, %s2240_s11 }
  0x79   : > { %726 = vrot.lane.b32.xlu1 %v627_v18, %s2234_s15 }
  0x7a   : > { %710 = vrot.lane.b32.xlu0 %v607_v21, %s2234_s15 }
  0x7d   : > { %868 = vrot.lane.b32.xlu1 %v629_v32, %s2236_s18 }
  0x7e   : > { %852 = vrot.lane.b32.xlu0 %v609_v34, %s2236_s18 }
  0x81   : > { %914 = vrot.lane.b32.xlu1 %v668_v40, %s2237_s19 }
  0x82   : > { %898 = vrot.lane.b32.xlu0 %v648_v42, %s2237_s19 }
  0x85   : > { %1056 = vrot.lane.b32.xlu1 %v670_v49, %s2240_s11 }
  0x86   : > { %1040 = vrot.lane.b32.xlu0 %v650_v50, %s2240_s11 }
  0x89   : > { %728 = vrot.lane.b32.xlu1 %v629_v32, %s2234_s15  ;;  %v671_v32 = vrot.slane %v2616_v53, 2 }
  0x8a   : > { %712 = vrot.lane.b32.xlu0 %v609_v34, %s2234_s15  ;;  %v672_v34 = vrot.slane %v2638_v62, 2 }
  0x8c   : > { %v673_v44 = vsel %vm635_vm3, %v671_v32, %v672_v34 }
  0x8d   : > { %774 = vrot.lane.b32.xlu1 %v668_v40, %s2235_s17  ;;  %v652_v40 = vrot.slane %v2640_v0, 2 }
  0x8e   : > { %758 = vrot.lane.b32.xlu0 %v648_v42, %s2235_s17 }
  0x8f   : > { %v653_v45 = vsel %vm635_vm3, %v651_v39, %v652_v40 }
  0x91   : > { %916 = vrot.lane.b32.xlu1 %v670_v49, %s2237_s19 }
  0x92   : > { %900 = vrot.lane.b32.xlu0 %v650_v50, %s2237_s19 }
  0x93   : > { %v2620_v55 = vpop.permute.xlu1 %814 }
  0x94   : > { %v2622_v56 = vpop.permute.xlu0 %798 }
  0x95   : > { %962 = vrot.lane.b32.xlu1 %v2616_v53, %s2238_s20 }
  0x96   : > { %946 = vrot.lane.b32.xlu0 %v2618_v54, %s2238_s20 }
  0x97   : > { %v2628_v57 = vpop.permute.xlu1 %816 }
  0x98   : > { %v2630_v58 = vpop.permute.xlu0 %800 }
  0x99   : > { %776 = vrot.lane.b32.xlu1 %v670_v49, %s2235_s17 }
  0x9a   : > { %760 = vrot.lane.b32.xlu0 %v650_v50, %s2235_s17 }
  0x9b   : > { %v2634_v60 = vpop.permute.xlu1 %720 }
  0x9c   : > { %v2636_v61 = vpop.permute.xlu0 %718 }
  0x9d   : > { %822 = vrot.lane.b32.xlu1 %v2616_v53, %s3343_s24 }
  0x9e   : > { %806 = vrot.lane.b32.xlu0 %v2618_v54, %s3343_s24 }
  0x9f   : > { %v2650_v8 = vpop.permute.xlu1 %766 }
  0xa0   : > { %v2652_v11 = vpop.permute.xlu0 %846 }
  0xa1   : > { %964 = vrot.lane.b32.xlu1 %v2638_v62, %s2238_s20 }
  0xa2   : > { %948 = vrot.lane.b32.xlu0 %v2640_v0, %s2238_s20 }
  0xa3   : > { %v2660_v14 = vpop.permute.xlu1 %768 }
  0xa4   : > { %v2662_v18 = vpop.permute.xlu0 %702 }
  0xa5   : > { %1010 = vrot.lane.b32.xlu1 %v632_v12, %s3344_s10  ;;  %v1086_v54 = vsel %vm502_vm1, %v2441_v36, %v2662_v18 }
  0xa6   : > { %994 = vrot.lane.b32.xlu0 %v612_v13, %s3344_s10 }
  0xa7   : > { %v2666_v21 = vpop.permute.xlu1 %862 }
  0xa8   : > { %v2668_v22 = vpop.permute.xlu0 %750 }
  0xa9   : > { %824 = vrot.lane.b32.xlu1 %v2638_v62, %s3343_s24  ;;  %v2756_v62 = vld [vmem:[#allocation2 + $0xc8] sm:$0xff] }
  0xaa   : > { %808 = vrot.lane.b32.xlu0 %v2640_v0, %s3343_s24  ;;  %v680_v53 = vrot.slane %v2756_v62, 1 }
  0xab   : > { %v2674_v28 = vpop.permute.xlu1 %704 }
  0xac   : > { %v2676_v31 = vpop.permute.xlu0 %752 }
  0xad   : > { %870 = vrot.lane.b32.xlu1 %v632_v12, %s2236_s18 }
  0xae   : > { %854 = vrot.lane.b32.xlu0 %v612_v13, %s2236_s18 }
  0xaf   : > { %v2686_v42 = vpop.permute.xlu1 %722 }
  0xb0   : > { %v2688_v43 = vpop.permute.xlu0 %706 }
  0xb1   : > { %1012 = vrot.lane.b32.xlu1 %v634_v35, %s3344_s10 }
  0xb2   : > { %996 = vrot.lane.b32.xlu0 %v614_v37, %s3344_s10 }
  0xb3   : > { %v2694_v46 = vpop.permute.xlu1 %864 }
  0xb4   : > { %v2696_v48 = vpop.permute.xlu0 %848 }
  0xb5   : > { %1058 = vrot.lane.b32.xlu1 %v673_v44, %s2240_s11 }
  0xb6   : > { %1042 = vrot.lane.b32.xlu0 %v653_v45, %s2240_s11 }
  0xb7   : > { %v2700_v49 = vpop.permute.xlu1 %910 }
  0xb8   : > { %v2702_v50 = vpop.permute.xlu0 %894 }
  0xb9   : > { %730 = vrot.lane.b32.xlu1 %v632_v12, %s2234_s15  ;;  %v675_v12 = vsel %vm635_vm3, %v672_v34, %v674_v1  ;;  %v2740_v1 = vld [vmem:[#allocation2 + $0xc0] sm:$0xff] }
  0xba   : > { %714 = vrot.lane.b32.xlu0 %v612_v13, %s2234_s15  ;;  %v655_v13 = vsel %vm635_vm3, %v652_v40, %v654_v2 }
  0xbb   : > { %v2706_v51 = vpop.permute.xlu1 %724 }
  0xbc   : > { %v2708_v52 = vpop.permute.xlu0 %708 }
  0xbd   : > { %872 = vrot.lane.b32.xlu1 %v634_v35, %s2236_s18 }
  0xbe   : > { %856 = vrot.lane.b32.xlu0 %v614_v37, %s2236_s18 }
  0xbf   : > { %v2712_v3 = vpop.permute.xlu1 %770 }
  0xc0   : > { %v2714_v5 = vpop.permute.xlu0 %754 }
  0xc1   : > { %918 = vrot.lane.b32.xlu1 %v673_v44, %s2237_s19 }
  0xc2   : > { %902 = vrot.lane.b32.xlu0 %v653_v45, %s2237_s19 }
  0xc3   : > { %v2720_v26 = vpop.permute.xlu1 %912 }
  0xc4   : > { %v2722_v27 = vpop.permute.xlu0 %896 }
  0xc5   : > { %1060 = vrot.lane.b32.xlu1 %v675_v12, %s2240_s11 }
  0xc6   : > { %1044 = vrot.lane.b32.xlu0 %v655_v13, %s2240_s11 }
  0xc7   : > { %v959_v24 = vpop.permute.xlu1 %958 }
  0xc8   : > { %v943_v25 = vpop.permute.xlu0 %942 }
  0xc9   : > { %732 = vrot.lane.b32.xlu1 %v634_v35, %s2234_s15 }
  0xca   : > { %716 = vrot.lane.b32.xlu0 %v614_v37, %s2234_s15  ;;  %s1920_s15 = sshll.u32 %s3367_s25, 1 }
  0xcb   : > { %v2728_v32 = vpop.permute.xlu1 %772 }
  0xcc   : > { %v2730_v39 = vpop.permute.xlu0 %756 }
  0xcd   : > { %3345 = vst [vmem:[#allocation7_spill] sm:$0xff] %v2730_v39  ;;  %778 = vrot.lane.b32.xlu1 %v673_v44, %s2235_s17 }
  0xce   : > { %762 = vrot.lane.b32.xlu0 %v653_v45, %s2235_s17 }
  0xcf   : > { %v2734_v34 = vpop.permute.xlu1 %818 }
  0xd0   : > { %v2736_v40 = vpop.permute.xlu0 %802 }
  0xd1   : > { %920 = vrot.lane.b32.xlu1 %v675_v12, %s2237_s19 }
  0xd2   : > { %904 = vrot.lane.b32.xlu0 %v655_v13, %s2237_s19 }
  0xd3   : > { %v2742_v35 = vpop.permute.xlu1 %960 }
  0xd4   : > { %v2744_v37 = vpop.permute.xlu0 %944 }
  0xd5   : > { %966 = vrot.lane.b32.xlu1 %v2740_v1, %s2238_s20 }
  0xd6   : > { %950 = vrot.lane.b32.xlu0 %v2411_v23, %s2238_s20 }
  0xd7   : > { %v1007_v44 = vpop.permute.xlu1 %1006 }
  0xd8   : > { %v991_v45 = vpop.permute.xlu0 %990 }
  0xd9   : > { %780 = vrot.lane.b32.xlu1 %v675_v12, %s2235_s17  ;;  %v1103_v12 = vsel %vm1102_vm5, %v1086_v54, %v2668_v22 }
  0xda   : > { %764 = vrot.lane.b32.xlu0 %v655_v13, %s2235_s17  ;;  %v679_v13 = vrot.slane %v2740_v1, 1  ;;  %v1120_v54 = vsel %vm1119_vm6, %v1103_v12, %v2622_v56 }
  0xdb   : > { %v2752_v2 = vpop.permute.xlu1 %820  ;;  %v1137_v56 = vsel %vm1136_vm7, %v1120_v54, %v2652_v11  ;;  %v566_v54 = vld [vmem:[#allocation2 + $0xd0] sm:$0x3] }
  0xdc   : > { %3346 = vst [vmem:[#allocation8_spill] sm:$0xff] %v2752_v2  ;;  %v2754_v0 = vpop.permute.xlu0 %804  ;;  %v1154_v39 = vsel %vm1153_vm8, %v1137_v56, %v2702_v50 }
  0xdd   : > { %3347 = vst [vmem:[#allocation9_spill] sm:$0xff] %v2754_v0  ;;  %826 = vrot.lane.b32.xlu1 %v2740_v1, %s3343_s24  ;;  %v1094_v0 = vsel %vm502_vm1, %v2411_v23, %v2636_v61 }
  0xde   : > { %810 = vrot.lane.b32.xlu0 %v2411_v23, %s3343_s24  ;;  %v1111_v18 = vsel %vm1102_vm5, %v1094_v0, %v2650_v8  ;;  %v681_v23 = vsel %vm594_vm2, %v679_v13, %v680_v53 }
  0xdf   : > { %v2772_v2 = vpop.permute.xlu1 %866  ;;  %v1128_v61 = vsel %vm1119_vm6, %v1111_v18, %v2620_v55 }
  0xe0   : > { %v2774_v36 = vpop.permute.xlu0 %850  ;;  %v1145_v8 = vsel %vm1136_vm7, %v1128_v61, %v2666_v21  ;;  %v1171_v21 = vsel %vm1170_vm9, %v1154_v39, %v943_v25 }
  0xe1   : > { %968 = vrot.lane.b32.xlu1 %v2756_v62, %s2238_s20  ;;  %v1162_v12 = vsel %vm1153_vm8, %v1145_v8, %v2700_v49  ;;  %v1188_v13 = vsel %vm1187_vm10, %v1171_v21, %v991_v45  ;;  %v684_v45 = vrot.slane %v2740_v1, 2  ;;  %v685_v8 = vrot.slane %v2756_v62, 2 }
  0xe2   : > { %952 = vrot.lane.b32.xlu0 %v2404_v17, %s2238_s20  ;;  %v1179_v55 = vsel %vm1170_vm9, %v1162_v12, %v959_v24  ;;  %v682_v24 = vrot.slane %v566_v54, 1  ;;  %v1095_v12 = vsel %vm502_vm1, %v2404_v17, %v2634_v60 }
  0xe3   : > { %v1009_v22 = vpop.permute.xlu1 %1008  ;;  %v1196_v11 = vsel %vm1187_vm10, %v1179_v55, %v1007_v44  ;;  %v1087_v44 = vsel %vm502_vm1, %v2447_v38, %v2674_v28  ;;  %v1112_v38 = vsel %vm1102_vm5, %v1095_v12, %v2660_v14 }
  0xe4   : > { %v993_v0 = vpop.permute.xlu0 %992  ;;  %v683_v56 = vsel %vm594_vm2, %v680_v53, %v682_v24  ;;  %v1104_v28 = vsel %vm1102_vm5, %v1087_v44, %v2676_v31 }
  0xe5   : > { %1014 = vrot.lane.b32.xlu1 %v681_v23, %s3344_s10  ;;  %v1121_v53 = vsel %vm1119_vm6, %v1104_v28, %v2630_v58 }
  0xe6   : > { %998 = vrot.lane.b32.xlu0 %v2428_v30, %s3344_s10  ;;  %v1138_v31 = vsel %vm1136_vm7, %v1121_v53, %v2696_v48 }
  0xe7   : > { %v1055_v18 = vpop.permute.xlu1 %1054 }
  0xe8   : > { %v1039_v49 = vpop.permute.xlu0 %1038  ;;  %v1213_v50 = vsel %vm1204_vm11, %v1196_v11, %v1055_v18 }
  0xe9   : > { %v1205_v61 = vsel %vm1204_vm11, %v1188_v13, %v1039_v49  ;;  %828 = vrot.lane.b32.xlu1 %v2756_v62, %s3343_s24  ;;  %2013 = vmatprep.mubr.msk.f32.mxu1 %vm1233_vm12, %v1213_v50 }
  0xea   : > { %812 = vrot.lane.b32.xlu0 %v2404_v17, %s3343_s24  ;;  %2001 = vmatprep.mubr.msk.f32.mxu0 %vm1233_vm12, %v1205_v61  ;;  %v1129_v17 = vsel %vm1119_vm6, %v1112_v38, %v2628_v57  ;;  %v569_v38 = vld [vmem:[#allocation2 + $0xe8] sm:$0x3] }
  0xeb   : > { %v727_v25 = vpop.permute.xlu1 %726  ;;  %v1146_v14 = vsel %vm1136_vm7, %v1129_v17, %v2694_v46  ;;  %v695_v53 = vrot.slane %v569_v38, 1 }
  0xec   : > { %v2810_v39 = vpop.permute.xlu0 %710  ;;  %v1163_v1 = vsel %vm1153_vm8, %v1146_v14, %v2720_v26  ;;  %v1098_v18 = vsel %vm502_vm1, %v2508_v6, %v727_v25  ;;  %v568_v25 = vld [vmem:[#allocation2 + $0xe0] sm:$0xff] }
  0xed   : > { %874 = vrot.lane.b32.xlu1 %v681_v23, %s2236_s18  ;;  %v1155_v23 = vsel %vm1153_vm8, %v1138_v31, %v2722_v27  ;;  %v1180_v57 = vsel %vm1170_vm9, %v1163_v1, %v2742_v35  ;;  %v687_v35 = vrot.slane %v566_v54, 2  ;;  %v1090_v17 = vsel %vm502_vm1, %v2510_v7, %v2810_v39 }
  0xee   : > { %858 = vrot.lane.b32.xlu0 %v2428_v30, %s2236_s18  ;;  %v686_v30 = vsel %vm635_vm3, %v684_v45, %v685_v8  ;;  %v1172_v58 = vsel %vm1170_vm9, %v1155_v23, %v2744_v37  ;;  %v1197_v46 = vsel %vm1187_vm10, %v1180_v57, %v1009_v22  ;;  %v693_v45 = vrot.slane %v568_v25, 1 }
  0xef   : > { %v2824_v55 = vpop.permute.xlu1 %868  ;;  %v1189_v48 = vsel %vm1187_vm10, %v1172_v58, %v993_v0  ;;  %v688_v0 = vsel %vm635_vm3, %v685_v8, %v687_v35  ;;  %v698_v58 = vrot.slane %v568_v25, 2 }
  0xf0   : > { %v2826_v21 = vpop.permute.xlu0 %852  ;;  %v696_v7 = vsel %vm594_vm2, %v693_v45, %v695_v53  ;;  %v3349_v53 = vld [vmem:[#allocation8_spill] sm:$0xff] }
  0xf1   : > { %1016 = vrot.lane.b32.xlu1 %v683_v56, %s3344_s10 }
  0xf2   : > { %1000 = vrot.lane.b32.xlu0 %v2425_v29, %s3344_s10 }
  0xf3   : > { %v2840_v60 = vpop.permute.xlu1 %914 }
  0xf4   : > { %v2842_v62 = vpop.permute.xlu0 %898 }
  0xf5   : > { %1062 = vrot.lane.b32.xlu1 %v686_v30, %s2240_s11 }
  0xf6   : > { %1046 = vrot.lane.b32.xlu0 %v2438_v33, %s2240_s11 }
  0xf7   : > { %v1057_v11 = vpop.permute.xlu1 %1056 }
  0xf8   : > { %v1041_v26 = vpop.permute.xlu0 %1040  ;;  %v1214_v13 = vsel %vm1204_vm11, %v1197_v46, %v1057_v11  ;;  %v700_v11 = vrot.slane %v569_v38, 2  ;;  %v1097_v38 = vsel %vm502_vm1, %v2406_v19, %v2706_v51 }
  0xf9   : > { %v1206_v27 = vsel %vm1204_vm11, %v1189_v48, %v1041_v26  ;;  %876 = vrot.lane.b32.xlu1 %v683_v56, %s2236_s18  ;;  %2014 = vmatmul.mubr.msk.f32.vlgmr.msra.gmra.mxu1 %vm1233_vm12, %v1214_v13 }
  0xfa   : > { %860 = vrot.lane.b32.xlu0 %v2425_v29, %s2236_s18  ;;  %2002 = vmatmul.mubr.msk.f32.vlgmr.msra.gmra.mxu0 %vm1233_vm12, %v1206_v27 }
  0xfb   : > { %v729_v37 = vpop.permute.xlu1 %728 }
  0xfc   : > { %v713_v22 = vpop.permute.xlu0 %712  ;;  %v1099_v8 = vsel %vm502_vm1, %v2521_v9, %v729_v37 }
  0xfd   : > { %922 = vrot.lane.b32.xlu1 %v686_v30, %s2237_s19  ;;  %v1091_v56 = vsel %vm502_vm1, %v2523_v10, %v713_v22 }
  0xfe   : > { %906 = vrot.lane.b32.xlu0 %v2438_v33, %s2237_s19  ;;  %v567_v33 = vld [vmem:[#allocation2 + $0xd8] sm:$0xff] }
  0xff   : > { %v775_v49 = vpop.permute.xlu1 %774  ;;  %v692_v44 = vrot.slane %v567_v33, 1  ;;  %v697_v57 = vrot.slane %v567_v33, 2 }
 0x100   : > { %v759_v50 = vpop.permute.xlu0 %758  ;;  %v1115_v61 = vsel %vm1102_vm5, %v1098_v18, %v775_v49  ;;  %v1096_v49 = vsel %vm502_vm1, %v2395_v15, %v2686_v42 }
 0x101   : > { %1064 = vrot.lane.b32.xlu1 %v688_v0, %s2240_s11  ;;  %v694_v9 = vsel %vm594_vm2, %v692_v44, %v693_v45  ;;  %v1107_v10 = vsel %vm1102_vm5, %v1090_v17, %v759_v50  ;;  %v699_v48 = vsel %vm635_vm3, %v697_v57, %v698_v58  ;;  %v1088_v50 = vsel %vm502_vm1, %v2397_v16, %v2688_v43  ;;  %v3348_v17 = vld [vmem:[#allocation7_spill] sm:$0xff] }
 0x102   : > { %1048 = vrot.lane.b32.xlu0 %v2452_v41, %s2240_s11 }
 0x103   : > { %v2878_v29 = vpop.permute.xlu1 %916 }
 0x104   : > { %v2880_v54 = vpop.permute.xlu0 %900 }
 0x105   : > { %924 = vrot.lane.b32.xlu1 %v688_v0, %s2237_s19 }
 0x106   : > { %908 = vrot.lane.b32.xlu0 %v2452_v41, %s2237_s19  ;;  %s452_s19 = scalar_lea.vmem %s3327_s6, %s1920_s15 }
 0x107   : > { %v2885_v6 = vpop.permute.xlu1 %962 }
 0x108   : > { %v2887_v24 = vpop.permute.xlu0 %946 }
 0x109   : > { %970 = vrot.lane.b32.xlu1 %v567_v33, %s2238_s20 }
 0x10a   : > { %954 = vrot.lane.b32.xlu0 %v2395_v15, %s2238_s20 }
 0x10b   : > { %v777_v41 = vpop.permute.xlu1 %776 }
 0x10c   : > { %v761_v12 = vpop.permute.xlu0 %760  ;;  %v1116_v28 = vsel %vm1102_vm5, %v1099_v8, %v777_v41 }
 0x10d   : > { %v1108_v30 = vsel %vm1102_vm5, %v1091_v56, %v761_v12  ;;  %972 = vrot.lane.b32.xlu1 %v568_v25, %s2238_s20 }
 0x10e   : > { %956 = vrot.lane.b32.xlu0 %v2406_v19, %s2238_s20 }
 0x10f   : > { %v823_v14 = vpop.permute.xlu1 %822 }
 0x110   : > { %v807_v31 = vpop.permute.xlu0 %806  ;;  %v1132_v1 = vsel %vm1119_vm6, %v1115_v61, %v823_v14  ;;  %v1113_v61 = vsel %vm1102_vm5, %v1096_v49, %v2712_v3  ;;  %v3350_v14 = vld [vmem:[#allocation9_spill] sm:$0xff] }
 0x111   : > { %v1124_v23 = vsel %vm1119_vm6, %v1107_v10, %v807_v31  ;;  %1018 = vrot.lane.b32.xlu1 %v694_v9, %s3344_s10  ;;  %v1130_v33 = vsel %vm1119_vm6, %v1113_v61, %v2734_v34 }
 0x112   : > { %1002 = vrot.lane.b32.xlu0 %v2462_v47, %s3344_s10  ;;  %v701_v47 = vsel %vm635_vm3, %v698_v58, %v700_v11  ;;  %v1147_v15 = vsel %vm1136_vm7, %v1130_v33, %v2772_v2 }
 0x113   : > { %v965_v39 = vpop.permute.xlu1 %964  ;;  %v1164_v42 = vsel %vm1153_vm8, %v1147_v15, %v2840_v60 }
 0x114   : > { %v949_v46 = vpop.permute.xlu0 %948  ;;  %v1181_v3 = vsel %vm1170_vm9, %v1164_v42, %v2885_v6 }
 0x115   : > { %1020 = vrot.lane.b32.xlu1 %v696_v7, %s3344_s10 }
 0x116   : > { %1004 = vrot.lane.b32.xlu0 %v2478_v59, %s3344_s10 }
 0x117   : > { %v1011_v26 = vpop.permute.xlu1 %1010 }
 0x118   : > { %v995_v13 = vpop.permute.xlu0 %994  ;;  %v1198_v34 = vsel %vm1187_vm10, %v1181_v3, %v1011_v26  ;;  %v3352_v26 = vld [vmem:[#allocation4_spill] sm:$0xff] }
 0x119   : > { %1066 = vrot.lane.b32.xlu1 %v699_v48, %s2240_s11 }
 0x11a   : > { %1050 = vrot.lane.b32.xlu0 %v2487_v63, %s2240_s11 }
 0x11b   : > { %v825_v27 = vpop.permute.xlu1 %824 }
 0x11c   : > { %v809_v35 = vpop.permute.xlu0 %808  ;;  %v1133_v37 = vsel %vm1119_vm6, %v1116_v28, %v825_v27  ;;  %v1089_v28 = vsel %vm502_vm1, %v2408_v20, %v2708_v52 }
 0x11d   : > { %v1125_v22 = vsel %vm1119_vm6, %v1108_v30, %v809_v35  ;;  %1068 = vrot.lane.b32.xlu1 %v701_v47, %s2240_s11  ;;  %v1114_v30 = vsel %vm1102_vm5, %v1097_v38, %v2728_v32  ;;  %v1106_v9 = vsel %vm1102_vm5, %v1089_v28, %v3348_v17 }
 0x11e   : > { %1052 = vrot.lane.b32.xlu0 %v2502_v4, %s2240_s11  ;;  %v1105_v4 = vsel %vm1102_vm5, %v1088_v50, %v2714_v5  ;;  %v1131_v10 = vsel %vm1119_vm6, %v1114_v30, %v3349_v53  ;;  %v1123_v31 = vsel %vm1119_vm6, %v1106_v9, %v3350_v14  ;;  %s3355_s11 = sshll.u32 %s2352_s12, 3 }
 0x11f   : > { %v871_v59 = vpop.permute.xlu1 %870  ;;  %v1122_v25 = vsel %vm1119_vm6, %v1105_v4, %v2736_v40  ;;  %v1148_v19 = vsel %vm1136_vm7, %v1131_v10, %v2824_v55  ;;  %v1140_v20 = vsel %vm1136_vm7, %v1123_v31, %v2826_v21  ;;  %s3200_s9 = scalar_lea.vmem %s3328_s7, %s3355_s11 }
 0x120   : > { %v855_v0 = vpop.permute.xlu0 %854  ;;  %v2926_v18 = vsel %vm1136_vm7, %v1132_v1, %v871_v59  ;;  %v1139_v16 = vsel %vm1136_vm7, %v1122_v25, %v2774_v36  ;;  %v1165_v51 = vsel %vm1153_vm8, %v1148_v19, %v2878_v29  ;;  %v1157_v52 = vsel %vm1153_vm8, %v1140_v20, %v2880_v54 }
 0x121   : > { %v2929_v63 = vsel %vm1136_vm7, %v1124_v23, %v855_v0  ;;  %v1156_v43 = vsel %vm1153_vm8, %v1139_v16, %v2842_v62  ;;  %v1182_v32 = vsel %vm1170_vm9, %v1165_v51, %v965_v39  ;;  %v1174_v57 = vsel %vm1170_vm9, %v1157_v52, %v949_v46  ;;  %v3351_v39 = vld [vmem:[#allocation3_spill] sm:$0xff] }
 0x122   : > { %v1173_v5 = vsel %vm1170_vm9, %v1156_v43, %v2887_v24 }
 0x123   : > { %v1013_v44 = vpop.permute.xlu1 %1012  ;;  %v1190_v40 = vsel %vm1187_vm10, %v1173_v5, %v995_v13 }
 0x124   : > { %v997_v45 = vpop.permute.xlu0 %996  ;;  %v1199_v58 = vsel %vm1187_vm10, %v1182_v32, %v1013_v44 }
 0x125   : > { %v1191_v7 = vsel %vm1187_vm10, %v1174_v57, %v997_v45 }
 0x127   : > { %v1059_v2 = vpop.permute.xlu1 %1058 }
 0x128   : > { %v1043_v8 = vpop.permute.xlu0 %1042  ;;  %v1215_v36 = vsel %vm1204_vm11, %v1198_v34, %v1059_v2 }
 0x129   : > { %v1207_v56 = vsel %vm1204_vm11, %v1190_v40, %v1043_v8  ;;  %2016 = vmatprep.mubr.msk.f32.mxu1 %vm1233_vm12, %v1215_v36 }
 0x12a   : > { %2004 = vmatprep.mubr.msk.f32.mxu0 %vm1233_vm12, %v1207_v56 }
 0x12b   : > { %v731_v60 = vpop.permute.xlu1 %730 }
 0x12c   : > { %v715_v62 = vpop.permute.xlu0 %714  ;;  %v1100_v46 = vsel %vm502_vm1, %v3351_v39, %v731_v60 }
 0x12d   : > { %v1092_v13 = vsel %vm502_vm1, %v3352_v26, %v715_v62 }
 0x12f   : > { %v873_v6 = vpop.permute.xlu1 %872 }
 0x130   : > { %v857_v41 = vpop.permute.xlu0 %856  ;;  %v2964_v24 = vsel %vm1136_vm7, %v1133_v37, %v873_v6 }
 0x131   : > { %v2967_v12 = vsel %vm1136_vm7, %v1125_v22, %v857_v41 }
 0x133   : > { %v919_v1 = vpop.permute.xlu1 %918 }
 0x134   : > { %v903_v23 = vpop.permute.xlu0 %902  ;;  %v1166_v40 = vsel %vm1153_vm8, %v2926_v18, %v919_v1 }
 0x135   : > { %v1158_v2 = vsel %vm1153_vm8, %v2929_v63, %v903_v23 }
 0x137   : > { %v1061_v48 = vpop.permute.xlu1 %1060 }
 0x138   : > { %v1045_v11 = vpop.permute.xlu0 %1044  ;;  %v1216_v55 = vsel %vm1204_vm11, %v1199_v58, %v1061_v48 }
 0x139   : > { %v1208_v21 = vsel %vm1204_vm11, %v1191_v7, %v1045_v11  ;;  %2017 = vmatmul.mubr.msk.f32.gmra.mxu1 %vm1233_vm12, %v1216_v55 }
 0x13a   : > { %2005 = vmatmul.mubr.msk.f32.gmra.mxu0 %vm1233_vm12, %v1208_v21 }
 0x13b   : > { %v2999_v29 = vpop.permute.xlu1 %732 }
 0x13c   : > { %v3001_v54 = vpop.permute.xlu0 %716 }
 0x13f   : > { %v779_v47 = vpop.permute.xlu1 %778 }
 0x140   : > { %v763_v27 = vpop.permute.xlu0 %762  ;;  %v1117_v35 = vsel %vm1102_vm5, %v1100_v46, %v779_v47  ;;  %v3353_v46 = vld [vmem:[#allocation5_spill] sm:$0xff] }
 0x141   : > { %v1109_v37 = vsel %vm1102_vm5, %v1092_v13, %v763_v27  ;;  %v1101_v26 = vsel %vm502_vm1, %v3353_v46, %v2999_v29  ;;  %v3354_v27 = vld [vmem:[#allocation6_spill] sm:$0xff] }
 0x143   : > { %v921_v22 = vpop.permute.xlu1 %920 }
 0x144   : > { %v905_v59 = vpop.permute.xlu0 %904  ;;  %v1167_v17 = vsel %vm1153_vm8, %v2964_v24, %v921_v22  ;;  %v1093_v22 = vsel %vm502_vm1, %v3354_v27, %v3001_v54 }
 0x145   : > { %v1159_v9 = vsel %vm1153_vm8, %v2967_v12, %v905_v59 }
 0x147   : > { %v967_v0 = vpop.permute.xlu1 %966 }
 0x148   : > { %v951_v49 = vpop.permute.xlu0 %950  ;;  %v1183_v8 = vsel %vm1170_vm9, %v1166_v40, %v967_v0 }
 0x149   : > { %v1175_v36 = vsel %vm1170_vm9, %v1158_v2, %v951_v49 }
 0x14b   : > { %v781_v50 = vpop.permute.xlu1 %780 }
 0x14c   : > { %v765_v61 = vpop.permute.xlu0 %764 }
 0x14d   : > { %v1110_v0 = vsel %vm1102_vm5, %v1093_v22, %v765_v61 }
 0x14f   : > { %v827_v4 = vpop.permute.xlu1 %826 }
 0x150   : > { %v811_v33 = vpop.permute.xlu0 %810  ;;  %v1134_v48 = vsel %vm1119_vm6, %v1117_v35, %v827_v4  ;;  %v1118_v35 = vsel %vm1102_vm5, %v1101_v26, %v781_v50 }
 0x151   : > { %v1126_v55 = vsel %vm1119_vm6, %v1109_v37, %v811_v33 }
 0x153   : > { %v969_v25 = vpop.permute.xlu1 %968 }
 0x154   : > { %v953_v44 = vpop.permute.xlu0 %952  ;;  %v1184_v53 = vsel %vm1170_vm9, %v1167_v17, %v969_v25 }
 0x155   : > { %v1176_v10 = vsel %vm1170_vm9, %v1159_v9, %v953_v44 }
 0x157   : > { %v1015_v45 = vpop.permute.xlu1 %1014 }
 0x158   : > { %v999_v15 = vpop.permute.xlu0 %998  ;;  %v1200_v56 = vsel %vm1187_vm10, %v1183_v8, %v1015_v45 }
 0x159   : > { %v1192_v62 = vsel %vm1187_vm10, %v1175_v36, %v999_v15 }
 0x15b   : > { %v829_v16 = vpop.permute.xlu1 %828 }
 0x15c   : > { %v813_v42 = vpop.permute.xlu0 %812  ;;  %v1135_v49 = vsel %vm1119_vm6, %v1118_v35, %v829_v16 }
 0x15d   : > { %v1127_v25 = vsel %vm1119_vm6, %v1110_v0, %v813_v42 }
 0x15f   : > { %v875_v43 = vpop.permute.xlu1 %874 }
 0x160   : > { %v859_v3 = vpop.permute.xlu0 %858  ;;  %v1151_v21 = vsel %vm1136_vm7, %v1134_v48, %v875_v43 }
 0x161   : > { %v1143_v13 = vsel %vm1136_vm7, %v1126_v55, %v859_v3 }
 0x163   : > { %v1017_v5 = vpop.permute.xlu1 %1016 }
 0x164   : > { %v1001_v34 = vpop.permute.xlu0 %1000  ;;  %v1201_v14 = vsel %vm1187_vm10, %v1184_v53, %v1017_v5 }
 0x165   : > { %v1193_v1 = vsel %vm1187_vm10, %v1176_v10, %v1001_v34 }
 0x167   : > { %v1063_v60 = vpop.permute.xlu1 %1062 }
 0x168   : > { %v1217_v6 = vsel %vm1204_vm11, %v1200_v56, %v1063_v60  ;;  %v1047_v41 = vpop.permute.xlu0 %1046  ;;  %v3072_v56 = vld [vmem:[%s3325_s4] ss:$0 sm:$0xff] }
 0x169   : > { %v1209_v38 = vsel %vm1204_vm11, %v1192_v62, %v1047_v41  ;;  %2019 = vmatprep.mubr.msk.f32.mxu1 %vm1233_vm12, %v1217_v6 }
 0x16a   : > { %2007 = vmatprep.mubr.msk.f32.mxu0 %vm1233_vm12, %v1209_v38 }
 0x16b   : > { %v877_v18 = vpop.permute.xlu1 %876 }
 0x16c   : > { %v861_v63 = vpop.permute.xlu0 %860  ;;  %v1152_v44 = vsel %vm1136_vm7, %v1135_v49, %v877_v18 }
 0x16d   : > { %v1144_v15 = vsel %vm1136_vm7, %v1127_v25, %v861_v63 }
 0x16f   : > { %v923_v28 = vpop.permute.xlu1 %922 }
 0x170   : > { %v907_v30 = vpop.permute.xlu0 %906  ;;  %v1168_v47 = vsel %vm1153_vm8, %v1151_v21, %v923_v28 }
 0x171   : > { %v1160_v59 = vsel %vm1153_vm8, %v1143_v13, %v907_v30 }
 0x173   : > { %v1065_v31 = vpop.permute.xlu1 %1064 }
 0x174   : > { %v1218_v23 = vsel %vm1204_vm11, %v1201_v14, %v1065_v31  ;;  %v1049_v19 = vpop.permute.xlu0 %1048 }
 0x175   : > { %v1210_v20 = vsel %vm1204_vm11, %v1193_v1, %v1049_v19  ;;  %2020 = vmatmul.mubr.msk.f32.gmra.mxu1 %vm1233_vm12, %v1218_v23 }
 0x176   : > { %2008 = vmatmul.mubr.msk.f32.gmra.mxu0 %vm1233_vm12, %v1210_v20 }
 0x177   : > { %v925_v24 = vpop.permute.xlu1 %924 }
 0x178   : > { %v909_v12 = vpop.permute.xlu0 %908  ;;  %v1169_v61 = vsel %vm1153_vm8, %v1152_v44, %v925_v24 }
 0x179   : > { %v1161_v43 = vsel %vm1153_vm8, %v1144_v15, %v909_v12 }
 0x17b   : > { %v971_v51 = vpop.permute.xlu1 %970 }
 0x17c   : > { %v955_v52 = vpop.permute.xlu0 %954  ;;  %v1185_v37 = vsel %vm1170_vm9, %v1168_v47, %v971_v51 }
 0x17d   : > { %v1177_v29 = vsel %vm1170_vm9, %v1160_v59, %v955_v52 }
 0x17f   : > { %v973_v32 = vpop.permute.xlu1 %972 }
 0x180   : > { %v957_v57 = vpop.permute.xlu0 %956  ;;  %v1186_v3 = vsel %vm1170_vm9, %v1169_v61, %v973_v32  ;;  %v1567_v61 = vlaneseq }
 0x181   : > { %v1178_v42 = vsel %vm1170_vm9, %v1161_v43, %v957_v57 }
 0x183   : > { %v1019_v58 = vpop.permute.xlu1 %1018 }
 0x184   : > { %v1003_v7 = vpop.permute.xlu0 %1002  ;;  %v1202_v4 = vsel %vm1187_vm10, %v1185_v37, %v1019_v58 }
 0x185   : > { %v1194_v54 = vsel %vm1187_vm10, %v1177_v29, %v1003_v7 }
 0x187   : > { %v1021_v11 = vpop.permute.xlu1 %1020 }
 0x188   : > { %v1005_v39 = vpop.permute.xlu0 %1004  ;;  %v1203_v5 = vsel %vm1187_vm10, %v1186_v3, %v1021_v11  ;;  %v1568_v3 = vshrl.u32 %v1567_v61, 7 }
 0x189   : > { %v1195_v40 = vsel %vm1187_vm10, %v1178_v42, %v1005_v39 }
 0x18b   : > { %v1067_v33 = vpop.permute.xlu1 %1066 }
 0x18c   : > { %v1219_v50 = vsel %vm1204_vm11, %v1202_v4, %v1067_v33  ;;  %v1051_v45 = vpop.permute.xlu0 %1050 }
 0x18d   : > { %v1211_v16 = vsel %vm1204_vm11, %v1194_v54, %v1051_v45  ;;  %2022 = vmatprep.mubr.msk.f32.mxu1 %vm1233_vm12, %v1219_v50 }
 0x18e   : > { %2010 = vmatprep.mubr.msk.f32.mxu0 %vm1233_vm12, %v1211_v16 }
 0x18f   : > { %v1069_v34 = vpop.permute.xlu1 %1068 }
 0x190   : > { %v1220_v2 = vsel %vm1204_vm11, %v1203_v5, %v1069_v34  ;;  %v1053_v8 = vpop.permute.xlu0 %1052 }
 0x191   : > { %v1212_v36 = vsel %vm1204_vm11, %v1195_v40, %v1053_v8  ;;  %2023 = vmatmul.mubr.msk.f32.gmra.mxu1 %vm1233_vm12, %v1220_v2 }
 0x192   : > { %2011 = vmatmul.mubr.msk.f32.gmra.mxu0 %vm1233_vm12, %v1212_v36  ;;  %v1569_v36 = vsub.s32 0, %v1568_v3 }
 0x1b9   : > { %v2015_v60 = vpop.f32.mrf.mxu1 }
 0x1ba   : > { %v2003_v62 = vpop.f32.mrf.mxu0  ;;  %v3075_v6 = vadd.f32 %v2015_v60, %v3072_v56 }
 0x1bb   : > { %v1392_v41 = vpop.f32.mrf.mxu1  ;;  %v3078_v38 = vadd.f32 %v2003_v62, %v3072_v56 }
 0x1bc   : > { %v1440_v18 = vmul.f32 %v3075_v6, %v3075_v6  ;;  %v3083_v63 = vadd.f32 %v3072_v56, %v1392_v41  ;;  %v1352_v10 = vpop.f32.mrf.mxu0 }
 0x1bd   : > { %v1432_v17 = vmul.f32 %v3078_v38, %v3078_v38  ;;  %v3093_v31 = vadd.f32 %v3072_v56, %v1352_v10  ;;  %v3172_v10 = vld [vmem:[%s3326_s5] ss:$0 sm:$0xff] }
 0x1be   : > { %v1439_v28 = vmul.f32 %v3083_v63, %v3083_v63  ;;  %v1474_v30 = vsel %vm1102_vm5, %v1440_v18, 0.0  ;;  %v1566_v18 = vld [vmem:[%s452_s19] sm:$0x3] }
 0x1bf   : > { %1475 = vadd.xlane.f32.xlu0 %v1474_v30  ;;  %v1450_v53 = vsel %vm1102_vm5, %v1432_v17, 0.0  ;;  %v1431_v12 = vmul.f32 %v3093_v31, %v3093_v31 }
 0x1c0   : > { %v1471_v9 = vsel %vm1102_vm5, %v1439_v28, 0.0  ;;  %v1589_v28 = vsub.s32 1, %v1568_v3 }
 0x1c1   : > { %1472 = vadd.xlane.f32.xlu1 %v1471_v9  ;;  %v1447_v7 = vsel %vm1102_vm5, %v1431_v12, 0.0 }
 0x1c2   : > { %v3180_v12 = vrot.slane %v1566_v18, %v1589_v28 }
 0x1c5   : > { %1451 = vadd.xlane.f32.xlu1 %v1450_v53 }
 0x1f9   : > { %v2018_v14 = vpop.f32.mrf.mxu1 }
 0x1fa   : > { %v3096_v1 = vadd.f32 %v2018_v14, %v3072_v56  ;;  %v2006_v23 = vpop.f32.mrf.mxu0  ;;  %v3174_v14 = vrot.slane %v1566_v18, %v1569_v36 }
 0x1fb   : > { %v1402_v19 = vpop.f32.mrf.mxu1  ;;  %v3106_v51 = vadd.f32 %v2006_v23, %v3072_v56 }
 0x1fc   : > { %v1442_v20 = vmul.f32 %v3096_v1, %v3096_v1  ;;  %v3101_v24 = vadd.f32 %v3072_v56, %v1402_v19  ;;  %v1362_v11 = vpop.f32.mrf.mxu0 }
 0x1fd   : > { %v1434_v58 = vmul.f32 %v3106_v51, %v3106_v51  ;;  %v3117_v21 = vadd.f32 %v3072_v56, %v1362_v11 }
 0x1fe   : > { %v1441_v52 = vmul.f32 %v3101_v24, %v3101_v24  ;;  %v1480_v32 = vsel %vm1102_vm5, %v1442_v20, 0.0 }
 0x1ff   : > { %1481 = vadd.xlane.f32.xlu0 %v1480_v32  ;;  %v1456_v48 = vsel %vm1102_vm5, %v1434_v58, 0.0  ;;  %v1433_v35 = vmul.f32 %v3117_v21, %v3117_v21 }
 0x200   : > { %v1477_v57 = vsel %vm1102_vm5, %v1441_v52, 0.0 }
 0x201   : > { %1478 = vadd.xlane.f32.xlu1 %v1477_v57  ;;  %v1453_v33 = vsel %vm1102_vm5, %v1433_v35, 0.0 }
 0x203   : > { %1448 = vadd.xlane.f32.xlu0 %v1447_v7 }
 0x207   : > { %1457 = vadd.xlane.f32.xlu0 %v1456_v48 }
 0x235   : > { %v2021_v55 = vpop.f32.mrf.mxu1 }
 0x236   : > { %v2009_v39 = vpop.f32.mrf.mxu0  ;;  %v3120_v46 = vadd.f32 %v2021_v55, %v3072_v56 }
 0x237   : > { %v1412_v26 = vpop.f32.mrf.mxu1  ;;  %v3133_v59 = vadd.f32 %v2009_v39, %v3072_v56 }
 0x238   : > { %v1444_v13 = vmul.f32 %v3120_v46, %v3120_v46  ;;  %v1372_v47 = vpop.f32.mrf.mxu0  ;;  %v3125_v27 = vadd.f32 %v3072_v56, %v1412_v26 }
 0x239   : > { %v3128_v22 = vadd.f32 %v3072_v56, %v1372_v47  ;;  %v1436_v4 = vmul.f32 %v3133_v59, %v3133_v59 }
 0x23a   : > { %v1443_v37 = vmul.f32 %v3125_v27, %v3125_v27  ;;  %v1486_v0 = vsel %vm1102_vm5, %v1444_v13, 0.0 }
 0x23b   : > { %1487 = vadd.xlane.f32.xlu0 %v1486_v0  ;;  %v1435_v49 = vmul.f32 %v3128_v22, %v3128_v22  ;;  %v1462_v44 = vsel %vm1102_vm5, %v1436_v4, 0.0 }
 0x23c   : > { %v1483_v29 = vsel %vm1102_vm5, %v1443_v37, 0.0 }
 0x23d   : > { %1484 = vadd.xlane.f32.xlu1 %v1483_v29  ;;  %v1459_v25 = vsel %vm1102_vm5, %v1435_v49, 0.0 }
 0x23f   : > { %1454 = vadd.xlane.f32.xlu0 %v1453_v33 }
 0x241   : > { %1460 = vadd.xlane.f32.xlu1 %v1459_v25 }
 0x243   : > { %1463 = vadd.xlane.f32.xlu0 %v1462_v44 }
 0x248   : > { %v1476_v54 = vpop.xlane.xlu0 %1475 }
 0x249   : > { %v1504_v50 = vmax.f32 %v1476_v54, 1e-24 }
 0x24a   : > { %v1473_v45 = vpop.xlane.xlu1 %1472 }
 0x24b   : > { %2096 = vrsqrt.f32 %v1504_v50  ;;  %v1503_v15 = vmax.f32 %v1473_v45, 1e-24 }
 0x24d   : > { %2098 = vrsqrt.f32 %v1503_v15 }
 0x24e   : > { %v1452_v16 = vpop.xlane.xlu1 %1451 }
 0x24f   : > { %v1496_v43 = vmax.f32 %v1452_v16, 1e-24 }
 0x251   : > { %2100 = vrsqrt.f32 %v1496_v43  ;;  %v2024_v42 = vpop.f32.mrf.mxu1 }
 0x252   : > { %v2012_v5 = vpop.f32.mrf.mxu0  ;;  %v3154_v40 = vadd.f32 %v2024_v42, %v3072_v56 }
 0x253   : > { %v3151_v34 = vadd.f32 %v2012_v5, %v3072_v56  ;;  %v1422_v2 = vpop.f32.mrf.mxu1 }
 0x254   : > { %v1382_v8 = vpop.f32.mrf.mxu0  ;;  %v3162_v41 = vadd.f32 %v3072_v56, %v1422_v2  ;;  %v1446_v30 = vmul.f32 %v3154_v40, %v3154_v40 }
 0x255   : > { %v1438_v60 = vmul.f32 %v3151_v34, %v3151_v34  ;;  %v3159_v62 = vadd.f32 %v3072_v56, %v1382_v8 }
 0x256   : > { %v1445_v23 = vmul.f32 %v3162_v41, %v3162_v41  ;;  %v1492_v57 = vsel %vm1102_vm5, %v1446_v30, 0.0 }
 0x257   : > { %v1437_v17 = vmul.f32 %v3159_v62, %v3159_v62  ;;  %v1468_v9 = vsel %vm1102_vm5, %v1438_v60, 0.0 }
 0x258   : > { %v2097_v53 = vpop.eup %2096  ;;  %1469 = vadd.xlane.f32.xlu0 %v1468_v9  ;;  %v1489_v7 = vsel %vm1102_vm5, %v1445_v23, 0.0 }
 0x259   : > { %v1536_v56 = vmul.f32 %v2097_v53, %v3075_v6  ;;  %v1465_v19 = vsel %vm1102_vm5, %v1437_v17, 0.0 }
 0x25a   : > { %v2099_v20 = vpop.eup %2098  ;;  %1466 = vadd.xlane.f32.xlu1 %v1465_v19 }
 0x25b   : > { %v1559_v52 = vmul.f32 %v3172_v10, %v1536_v56  ;;  %v1535_v32 = vmul.f32 %v2099_v20, %v3083_v63 }
 0x25c   : > { %1493 = vadd.xlane.f32.xlu0 %v1492_v57 }
 0x25d   : > { %v1580_v58 = vmul.f32 %v3174_v14, %v1559_v52  ;;  %v1558_v6 = vmul.f32 %v3172_v10, %v1535_v32 }
 0x25e   : > { %v2101_v48 = vpop.eup %2100  ;;  %1490 = vadd.xlane.f32.xlu1 %v1489_v7 }
 0x25f   : > { %v1600_v11 = vadd.f32 %v3180_v12, %v1580_v58  ;;  %v1579_v55 = vmul.f32 %v3174_v14, %v1558_v6  ;;  %v1528_v39 = vmul.f32 %v2101_v48, %v3078_v38 }
 0x261   : > { %v1953_v26 = vmul.f32 -1.442695, %v1600_v11  ;;  %v1599_v63 = vadd.f32 %v3180_v12, %v1579_v55  ;;  %v1551_v13 = vmul.f32 %v3172_v10, %v1528_v39 }
 0x263   : > { %2102 = vpow2.f32 %v1953_v26  ;;  %v1952_v47 = vmul.f32 -1.442695, %v1599_v63  ;;  %v1572_v35 = vmul.f32 %v3174_v14, %v1551_v13 }
 0x265   : > { %2104 = vpow2.f32 %v1952_v47  ;;  %v1592_v37 = vadd.f32 %v3180_v12, %v1572_v35 }
 0x267   : > { %v1945_v0 = vmul.f32 -1.442695, %v1592_v37 }
 0x269   : > { %2106 = vpow2.f32 %v1945_v0 }
 0x270   : > { %v2103_v49 = vpop.eup %2102 }
 0x271   : > { %v1664_v29 = vadd.f32 1.0, %v2103_v49 }
 0x272   : > { %v2105_v4 = vpop.eup %2104 }
 0x273   : > { %2108 = vrcp.f32 %v1664_v29  ;;  %v1663_v38 = vadd.f32 1.0, %v2105_v4 }
 0x275   : > { %2110 = vrcp.f32 %v1663_v38 }
 0x276   : > { %v2107_v33 = vpop.eup %2106 }
 0x277   : > { %v1656_v25 = vadd.f32 1.0, %v2107_v33 }
 0x279   : > { %2112 = vrcp.f32 %v1656_v25 }
 0x280   : > { %v2109_v44 = vpop.eup %2108 }
 0x281   : > { %v1712_v54 = vmul.f32 %v2109_v44, %v1600_v11 }
 0x282   : > { %v2111_v50 = vpop.eup %2110 }
 0x283   : > { %1728 = vst.msk [vmem:[%s3200_s9 + $0x48] sm:$0xff] %vm1102_vm5, %v1712_v54  ;;  %v1711_v45 = vmul.f32 %v2111_v50, %v1599_v63 }
 0x285   : > { %1727 = vst.msk [vmem:[%s3200_s9 + $0x40] sm:$0xff] %vm1102_vm5, %v1711_v45 }
 0x286   : > { %v2113_v15 = vpop.eup %2112 }
 0x287   : > { %v1704_v61 = vmul.f32 %v2113_v15, %v1592_v37 }
 0x288   : > { %v1482_v16 = vpop.xlane.xlu0 %1481 }
 0x289   : > { %1720 = vst.msk [vmem:[%s3200_s9 + $0x8] sm:$0xff] %vm1102_vm5, %v1704_v61  ;;  %v1506_v43 = vmax.f32 %v1482_v16, 1e-24 }
 0x28a   : > { %v1479_v3 = vpop.xlane.xlu1 %1478 }
 0x28b   : > { %2114 = vrsqrt.f32 %v1506_v43  ;;  %v1505_v42 = vmax.f32 %v1479_v3, 1e-24 }
 0x28c   : > { %v1449_v5 = vpop.xlane.xlu0 %1448 }
 0x28d   : > { %2116 = vrsqrt.f32 %v1505_v42  ;;  %v1495_v2 = vmax.f32 %v1449_v5, 1e-24 }
 0x28f   : > { %2118 = vrsqrt.f32 %v1495_v2 }
 0x290   : > { %v1458_v8 = vpop.xlane.xlu0 %1457 }
 0x291   : > { %v1498_v36 = vmax.f32 %v1458_v8, 1e-24 }
 0x293   : > { %2120 = vrsqrt.f32 %v1498_v36 }
 0x298   : > { %v2115_v60 = vpop.eup %2114 }
 0x299   : > { %v1538_v18 = vmul.f32 %v2115_v60, %v3096_v1 }
 0x29a   : > { %v2117_v28 = vpop.eup %2116 }
 0x29b   : > { %v1561_v30 = vmul.f32 %v3172_v10, %v1538_v18  ;;  %v1537_v17 = vmul.f32 %v2117_v28, %v3101_v24 }
 0x29c   : > { %v2119_v9 = vpop.eup %2118 }
 0x29d   : > { %v1582_v53 = vmul.f32 %v3174_v14, %v1561_v30  ;;  %v1560_v56 = vmul.f32 %v3172_v10, %v1537_v17  ;;  %v1527_v23 = vmul.f32 %v2119_v9, %v3093_v31 }
 0x29f   : > { %v1602_v19 = vadd.f32 %v3180_v12, %v1582_v53  ;;  %v1581_v20 = vmul.f32 %v3174_v14, %v1560_v56  ;;  %v1550_v52 = vmul.f32 %v3172_v10, %v1527_v23 }
 0x2a0   : > { %v2121_v32 = vpop.eup %2120 }
 0x2a1   : > { %v1955_v1 = vmul.f32 -1.442695, %v1602_v19  ;;  %v1601_v57 = vadd.f32 %v3180_v12, %v1581_v20  ;;  %v1571_v58 = vmul.f32 %v3174_v14, %v1550_v52  ;;  %v1530_v24 = vmul.f32 %v2121_v32, %v3106_v51 }
 0x2a3   : > { %2122 = vpow2.f32 %v1955_v1  ;;  %v1954_v6 = vmul.f32 -1.442695, %v1601_v57  ;;  %v1591_v7 = vadd.f32 %v3180_v12, %v1571_v58  ;;  %v1553_v31 = vmul.f32 %v3172_v10, %v1530_v24 }
 0x2a5   : > { %2124 = vpow2.f32 %v1954_v6  ;;  %v1944_v48 = vmul.f32 -1.442695, %v1591_v7  ;;  %v1574_v11 = vmul.f32 %v3174_v14, %v1553_v31 }
 0x2a7   : > { %2126 = vpow2.f32 %v1944_v48  ;;  %v1594_v55 = vadd.f32 %v3180_v12, %v1574_v11 }
 0x2a9   : > { %v1947_v39 = vmul.f32 -1.442695, %v1594_v55 }
 0x2ab   : > { %2128 = vpow2.f32 %v1947_v39 }
 0x2b0   : > { %v2123_v26 = vpop.eup %2122 }
 0x2b1   : > { %v1666_v63 = vadd.f32 1.0, %v2123_v26 }
 0x2b2   : > { %v2125_v13 = vpop.eup %2124 }
 0x2b3   : > { %2130 = vrcp.f32 %v1666_v63  ;;  %v1665_v51 = vadd.f32 1.0, %v2125_v13 }
 0x2b4   : > { %v2127_v47 = vpop.eup %2126 }
 0x2b5   : > { %2132 = vrcp.f32 %v1665_v51  ;;  %v1655_v35 = vadd.f32 1.0, %v2127_v47 }
 0x2b7   : > { %2134 = vrcp.f32 %v1655_v35 }
 0x2b8   : > { %v2129_v37 = vpop.eup %2128 }
 0x2b9   : > { %v1658_v0 = vadd.f32 1.0, %v2129_v37 }
 0x2bb   : > { %2136 = vrcp.f32 %v1658_v0 }
 0x2c0   : > { %v2131_v49 = vpop.eup %2130 }
 0x2c1   : > { %v1714_v29 = vmul.f32 %v2131_v49, %v1602_v19 }
 0x2c2   : > { %v2133_v4 = vpop.eup %2132 }
 0x2c3   : > { %1730 = vst.msk [vmem:[%s3200_s9 + $0x58] sm:$0xff] %vm1102_vm5, %v1714_v29  ;;  %v1713_v38 = vmul.f32 %v2133_v4, %v1601_v57 }
 0x2c4   : > { %v2135_v33 = vpop.eup %2134  ;;  %v1488_v25 = vpop.xlane.xlu0 %1487 }
 0x2c5   : > { %1729 = vst.msk [vmem:[%s3200_s9 + $0x50] sm:$0xff] %vm1102_vm5, %v1713_v38  ;;  %v1703_v44 = vmul.f32 %v2135_v33, %v1591_v7  ;;  %v1508_v54 = vmax.f32 %v1488_v25, 1e-24 }
 0x2c6   : > { %v1485_v50 = vpop.xlane.xlu1 %1484 }
 0x2c7   : > { %1719 = vst.msk [vmem:[%s3200_s9] sm:$0xff] %vm1102_vm5, %v1703_v44  ;;  %2138 = vrsqrt.f32 %v1508_v54  ;;  %v1507_v45 = vmax.f32 %v1485_v50, 1e-24 }
 0x2c8   : > { %v2137_v15 = vpop.eup %2136  ;;  %v1455_v61 = vpop.xlane.xlu0 %1454 }
 0x2c9   : > { %v1706_v16 = vmul.f32 %v2137_v15, %v1594_v55  ;;  %2140 = vrsqrt.f32 %v1507_v45  ;;  %v1497_v43 = vmax.f32 %v1455_v61, 1e-24 }
 0x2ca   : > { %v1461_v3 = vpop.xlane.xlu1 %1460 }
 0x2cb   : > { %1722 = vst.msk [vmem:[%s3200_s9 + $0x18] sm:$0xff] %vm1102_vm5, %v1706_v16  ;;  %2142 = vrsqrt.f32 %v1497_v43  ;;  %v1499_v42 = vmax.f32 %v1461_v3, 1e-24 }
 0x2cc   : > { %v1464_v5 = vpop.xlane.xlu0 %1463 }
 0x2cd   : > { %2144 = vrsqrt.f32 %v1499_v42  ;;  %v1500_v2 = vmax.f32 %v1464_v5, 1e-24 }
 0x2cf   : > { %2146 = vrsqrt.f32 %v1500_v2 }
 0x2d4   : > { %v2139_v8 = vpop.eup %2138 }
 0x2d5   : > { %v1540_v36 = vmul.f32 %v2139_v8, %v3120_v46 }
 0x2d6   : > { %v2141_v60 = vpop.eup %2140 }
 0x2d7   : > { %v1563_v18 = vmul.f32 %v3172_v10, %v1540_v36  ;;  %v1539_v28 = vmul.f32 %v2141_v60, %v3125_v27 }
 0x2d8   : > { %v2143_v30 = vpop.eup %2142 }
 0x2d9   : > { %v1584_v17 = vmul.f32 %v3174_v14, %v1563_v18  ;;  %v1562_v9 = vmul.f32 %v3172_v10, %v1539_v28  ;;  %v1529_v53 = vmul.f32 %v2143_v30, %v3117_v21 }
 0x2da   : > { %v2145_v56 = vpop.eup %2144 }
 0x2db   : > { %v3239_v23 = vadd.f32 %v3180_v12, %v1584_v17  ;;  %v1583_v19 = vmul.f32 %v3174_v14, %v1562_v9  ;;  %v1552_v46 = vmul.f32 %v3172_v10, %v1529_v53  ;;  %v1531_v20 = vmul.f32 %v2145_v56, %v3128_v22 }
 0x2dc   : > { %v2147_v52 = vpop.eup %2146 }
 0x2dd   : > { %v1957_v27 = vmul.f32 -1.442695, %v3239_v23  ;;  %v3246_v32 = vadd.f32 %v3180_v12, %v1583_v19  ;;  %v1573_v1 = vmul.f32 %v3174_v14, %v1552_v46  ;;  %v1554_v21 = vmul.f32 %v3172_v10, %v1531_v20 }
 0x2de   : > { %v1532_v57 = vmul.f32 %v2147_v52, %v3133_v59 }
 0x2df   : > { %2148 = vpow2.f32 %v1957_v27  ;;  %v1956_v58 = vmul.f32 -1.442695, %v3246_v32  ;;  %v3253_v24 = vadd.f32 %v3180_v12, %v1573_v1  ;;  %v1575_v22 = vmul.f32 %v3174_v14, %v1554_v21 }
 0x2e0   : > { %v1555_v6 = vmul.f32 %v3172_v10, %v1532_v57 }
 0x2e1   : > { %2150 = vpow2.f32 %v1956_v58  ;;  %v1946_v7 = vmul.f32 -1.442695, %v3253_v24  ;;  %v3259_v31 = vadd.f32 %v3180_v12, %v1575_v22  ;;  %v1470_v48 = vpop.xlane.xlu0 %1469 }
 0x2e2   : > { %v1576_v11 = vmul.f32 %v3174_v14, %v1555_v6  ;;  %v1502_v59 = vmax.f32 %v1470_v48, 1e-24 }
 0x2e3   : > { %2152 = vpow2.f32 %v1946_v7  ;;  %v1948_v55 = vmul.f32 -1.442695, %v3259_v31  ;;  %v1467_v39 = vpop.xlane.xlu1 %1466 }
 0x2e4   : > { %v3264_v26 = vadd.f32 %v3180_v12, %v1576_v11  ;;  %2154 = vrsqrt.f32 %v1502_v59  ;;  %v1501_v63 = vmax.f32 %v1467_v39, 1e-24 }
 0x2e5   : > { %2156 = vpow2.f32 %v1948_v55  ;;  %v1494_v13 = vpop.xlane.xlu0 %1493 }
 0x2e6   : > { %v1949_v51 = vmul.f32 -1.442695, %v3264_v26  ;;  %2158 = vrsqrt.f32 %v1501_v63  ;;  %v1510_v47 = vmax.f32 %v1494_v13, 1e-24 }
 0x2e7   : > { %v1491_v35 = vpop.xlane.xlu1 %1490 }
 0x2e8   : > { %2160 = vpow2.f32 %v1949_v51  ;;  %v1509_v37 = vmax.f32 %v1491_v35, 1e-24 }
 0x2e9   : > { %2162 = vrsqrt.f32 %v1510_v47 }
 0x2ea   : > { %2164 = vrsqrt.f32 %v1509_v37 }
 0x2ec   : > { %v2149_v0 = vpop.eup %2148 }
 0x2ed   : > { %v1668_v49 = vadd.f32 1.0, %v2149_v0 }
 0x2ee   : > { %v2151_v29 = vpop.eup %2150 }
 0x2ef   : > { %2166 = vrcp.f32 %v1668_v49  ;;  %v1667_v4 = vadd.f32 1.0, %v2151_v29 }
 0x2f0   : > { %v2153_v38 = vpop.eup %2152 }
 0x2f1   : > { %v2155_v33 = vpop.eup %2154  ;;  %2168 = vrcp.f32 %v1667_v4  ;;  %v1657_v25 = vadd.f32 1.0, %v2153_v38 }
 0x2f2   : > { %v2157_v44 = vpop.eup %2156  ;;  %v1534_v54 = vmul.f32 %v2155_v33, %v3151_v34 }
 0x2f3   : > { %v2159_v50 = vpop.eup %2158  ;;  %2170 = vrcp.f32 %v1657_v25  ;;  %v1659_v45 = vadd.f32 1.0, %v2157_v44 }
 0x2f4   : > { %v1557_v15 = vmul.f32 %v3172_v10, %v1534_v54  ;;  %v1533_v61 = vmul.f32 %v2159_v50, %v3159_v62 }
 0x2f5   : > { %v2161_v16 = vpop.eup %2160  ;;  %2172 = vrcp.f32 %v1659_v45 }
 0x2f6   : > { %v2163_v43 = vpop.eup %2162  ;;  %v1660_v3 = vadd.f32 1.0, %v2161_v16  ;;  %v1578_v42 = vmul.f32 %v3174_v14, %v1557_v15  ;;  %v1556_v5 = vmul.f32 %v3172_v10, %v1533_v61 }
 0x2f7   : > { %v2165_v2 = vpop.eup %2164  ;;  %v1542_v8 = vmul.f32 %v2163_v43, %v3154_v40 }
 0x2f8   : > { %2174 = vrcp.f32 %v1660_v3  ;;  %v1598_v34 = vadd.f32 %v3180_v12, %v1578_v42  ;;  %v1577_v36 = vmul.f32 %v3174_v14, %v1556_v5  ;;  %v1541_v60 = vmul.f32 %v2165_v2, %v3162_v41 }
 0x2f9   : > { %v1565_v62 = vmul.f32 %v3172_v10, %v1542_v8 }
 0x2fa   : > { %v1951_v18 = vmul.f32 -1.442695, %v1598_v34  ;;  %v1597_v28 = vadd.f32 %v3180_v12, %v1577_v36  ;;  %v1564_v30 = vmul.f32 %v3172_v10, %v1541_v60 }
 0x2fb   : > { %v1586_v17 = vmul.f32 %v3174_v14, %v1565_v62 }
 0x2fc   : > { %v2167_v9 = vpop.eup %2166  ;;  %2176 = vpow2.f32 %v1951_v18  ;;  %v1950_v40 = vmul.f32 -1.442695, %v1597_v28  ;;  %v1585_v53 = vmul.f32 %v3174_v14, %v1564_v30 }
 0x2fd   : > { %v1716_v56 = vmul.f32 %v2167_v9, %v3239_v23  ;;  %v1606_v41 = vadd.f32 %v3180_v12, %v1586_v17 }
 0x2fe   : > { %v2169_v19 = vpop.eup %2168  ;;  %2178 = vpow2.f32 %v1950_v40  ;;  %v1605_v46 = vadd.f32 %v3180_v12, %v1585_v53 }
 0x2ff   : > { %1732 = vst.msk [vmem:[%s3200_s9 + $0x68] sm:$0xff] %vm1102_vm5, %v1716_v56  ;;  %v1715_v10 = vmul.f32 %v2169_v19, %v3246_v32  ;;  %v1959_v20 = vmul.f32 -1.442695, %v1606_v41 }
 0x300   : > { %v2171_v52 = vpop.eup %2170  ;;  %v1958_v27 = vmul.f32 -1.442695, %v1605_v46 }
 0x301   : > { %1731 = vst.msk [vmem:[%s3200_s9 + $0x60] sm:$0xff] %vm1102_vm5, %v1715_v10  ;;  %v1705_v14 = vmul.f32 %v2171_v52, %v3253_v24  ;;  %2180 = vpow2.f32 %v1959_v20 }
 0x302   : > { %v2173_v23 = vpop.eup %2172  ;;  %2182 = vpow2.f32 %v1958_v27 }
 0x303   : > { %1721 = vst.msk [vmem:[%s3200_s9 + $0x10] sm:$0xff] %vm1102_vm5, %v1705_v14  ;;  %v1707_v1 = vmul.f32 %v2173_v23, %v3259_v31 }
 0x305   : > { %v2175_v12 = vpop.eup %2174  ;;  %1723 = vst.msk [vmem:[%s3200_s9 + $0x20] sm:$0xff] %vm1102_vm5, %v1707_v1 }
 0x306   : > { %v1708_v21 = vmul.f32 %v2175_v12, %v3264_v26 }
 0x308   : > { %1724 = vst.msk [vmem:[%s3200_s9 + $0x28] sm:$0xff] %vm1102_vm5, %v1708_v21 }
 0x309   : > { %v2177_v32 = vpop.eup %2176 }
 0x30a   : > { %v1662_v57 = vadd.f32 1.0, %v2177_v32 }
 0x30b   : > { %v2179_v58 = vpop.eup %2178 }
 0x30c   : > { %2184 = vrcp.f32 %v1662_v57  ;;  %v1661_v24 = vadd.f32 1.0, %v2179_v58 }
 0x30e   : > { %v2181_v22 = vpop.eup %2180  ;;  %2186 = vrcp.f32 %v1661_v24 }
 0x30f   : > { %v2183_v6 = vpop.eup %2182  ;;  %v1670_v7 = vadd.f32 1.0, %v2181_v22 }
 0x310   : > { %v1669_v31 = vadd.f32 1.0, %v2183_v6 }
 0x311   : > { %2188 = vrcp.f32 %v1670_v7 }
 0x312   : > { %2190 = vrcp.f32 %v1669_v31 }
 0x319   : > { %v2185_v48 = vpop.eup %2184 }
 0x31a   : > { %v1710_v11 = vmul.f32 %v2185_v48, %v1598_v34 }
 0x31b   : > { %v2187_v59 = vpop.eup %2186 }
 0x31c   : > { %1726 = vst.msk [vmem:[%s3200_s9 + $0x38] sm:$0xff] %vm1102_vm5, %v1710_v11  ;;  %v1709_v55 = vmul.f32 %v2187_v59, %v1597_v28 }
 0x31e   : > { %v2189_v39 = vpop.eup %2188  ;;  %1725 = vst.msk [vmem:[%s3200_s9 + $0x30] sm:$0xff] %vm1102_vm5, %v1709_v55 }
 0x31f   : > { %v2191_v26 = vpop.eup %2190  ;;  %v1718_v63 = vmul.f32 %v2189_v39, %v1606_v41 }
 0x320   : > { %v1717_v13 = vmul.f32 %v2191_v26, %v1605_v46 }
 0x321   : > { %1734 = vst.msk [vmem:[%s3200_s9 + $0x78] sm:$0xff] %vm1102_vm5, %v1718_v63 }
 0x322   : > { %1733 = vst.msk [vmem:[%s3200_s9 + $0x70] sm:$0xff] %vm1102_vm5, %v1717_v13 }
 0x323 PF: > { %s17_s28 = sadd.s32 1, %s2230_s28   ;;  %s3356_s24 = smov %s2222_s26 }
 0x324   : > { %p14_p12 = scmp.ge.s32.totalorder %s17_s28, 6   ;;  %s3357_s25 = smov %s2226_s27 }
 0x325   : > { %s3358_s26 = smov %s3361_s29  ;;  %s3359_s27 = smov %s3365_s30 }
 0x326   :  { %16 = sbr.rel (!%p14_p12) target bundleno = 3 (0x3), region = 89 }

</bundles_post_ra>
